<compile_context>
chip_gen: v5e
topology: v5e:2x2
jax: 0.10.0
libtpu: 0.0.40
codegen_flags: <defaults>
</compile_context>

<pallas_src>
import jax
import jax.numpy as jnp
from jax.experimental import pallas as pl
from jax.experimental.pallas import tpu as pltpu

_MIB = 1 << 20


def spr_kernel(x_ref, wbig_ref, b1_ref, w2_ref, b2_ref, out_ref, acc_ref):
    # x_ref   : (TB, CS_TILE)   x in native dtype, lane-dense flattened NCHW
    # wbig_ref: (CS_TILE, Cr)   fused (pooling @ fc1) weight slab
    # b1_ref  : (1, Cr) f32     fc1 bias
    # w2_ref  : (Cr, C) f32     fc2 weight (transposed)
    # b2_ref  : (1, C)  f32     fc2 bias
    # out_ref : (TB, C)         sigmoid attention weights
    # acc_ref : (TB, Cr) f32    fc1 pre-activation accumulator over C*S tiles
    k = pl.program_id(1)

    @pl.when(k == 0)
    def _init():
        acc_ref[...] = jnp.zeros_like(acc_ref)

    # Pooling + fc1 in one MXU matmul (f32 accumulation).
    acc_ref[...] += jnp.dot(x_ref[...], wbig_ref[...],
                            preferred_element_type=jnp.float32)

    # Tiny epilogue (bias -> ReLU -> fc2 -> sigmoid).  Computed unconditionally
    # (so no matmul sits inside a conditional region) but stored only on the
    # last reduction step; for the common single-K-step case this is free.
    y1 = jnp.maximum(acc_ref[...] + b1_ref[...], 0.0)
    y2 = jnp.dot(y1, w2_ref[...], preferred_element_type=jnp.float32) + b2_ref[...]
    y = jax.nn.sigmoid(y2).astype(out_ref.dtype)

    @pl.when(k == pl.num_programs(1) - 1)
    def _store():
        out_ref[...] = y


def _round_up(v, m):
    return -(-v // m) * m


def _tpu_vmem_and_cores():
    """Best-effort (VMEM bytes per TensorCore, TensorCores per chip)."""
    vmem_bytes, cores = 128 * _MIB, 1
    try:
        info_fn = getattr(pltpu, "get_tpu_info", None)
        if info_fn is not None:
            vmem_bytes = int(getattr(info_fn(), "vmem_capacity_bytes", vmem_bytes))
    except Exception:
        pass
    kind = ""
    try:
        kind = jax.devices()[0].device_kind.lower()
    except Exception:
        pass
    if "7" in kind or vmem_bytes <= 80 * _MIB:
        cores = 2                       # v7x-class: 64 MiB VMEM, 2 TensorCores
    return vmem_bytes, cores


def _select_tiling(B, C, S, Cr, x_itemsize):
    """Generation-aware (TB, CS_TILE, vmem_limit_bytes)."""
    CS = C * S
    vmem_bytes, cores = _tpu_vmem_and_cores()
    if vmem_bytes <= 80 * _MIB:          # v7x-class: 64 MiB VMEM per core
        x_budget, w_budget, vmem_limit = 11 * _MIB, 6 * _MIB, 48 * _MIB
    else:                                # v5e / v6e: 128 MiB VMEM
        x_budget, w_budget, vmem_limit = 20 * _MIB, 12 * _MIB, 80 * _MIB

    # Reduction-axis tile: split C*S only when the fused weight slab is too big
    # for VMEM; tiles must divide C*S exactly (never pad a reduction axis).
    lane_cr = _round_up(max(Cr, 1), 128)        # lane padding of (*, Cr) blocks
    cs_tile = CS
    if CS * lane_cr * x_itemsize > w_budget and CS % 128 == 0:
        t, best = 128, None
        while t <= CS:
            if CS % t == 0 and t * lane_cr * x_itemsize <= w_budget:
                best = t
            t += 128
        if best is not None:
            cs_tile = best

    # Batch tile: as big as the budget allows, a multiple of 8 (or the whole
    # batch) so cdiv-padded blocks stay layout-legal.  A single grid step is
    # fine on 1-TC chips; on v7x aim for an even number of steps (2 cores).
    row_bytes = max(1, cs_tile * x_itemsize)
    tb_cap = min(4096, max(8, (x_budget // row_bytes) // 8 * 8))
    if B <= tb_cap:
        if cores >= 2 and B > 8:
            tb = min(B, _round_up(-(-B // 2), 8))      # exactly 2 batch steps
        else:
            tb = B                                     # one big step (1 TC)
    else:
        tb = tb_cap
        steps = -(-B // tb)
        if cores >= 2 and steps % 2 == 1:
            cand = _round_up(-(-B // (steps + 1)), 8)
            if cand >= 8 and (-(-B // cand)) % 2 == 0:
                tb = cand

    # Never request less VMEM than the chosen blocks actually need.
    def padded(r, c, itemsize):
        return _round_up(max(r, 1), 8) * _round_up(max(c, 1), 128) * itemsize

    need = (2 * padded(tb, cs_tile, x_itemsize)        # x blocks (double-buffered)
            + 2 * padded(cs_tile, Cr, x_itemsize)      # Wbig blocks
            + 2 * padded(tb, C, x_itemsize)            # out blocks
            + padded(tb, Cr, 4)                        # accumulator scratch
            + padded(Cr, C, 4) + 2 * padded(1, max(Cr, C), 4))
    vmem_limit = max(vmem_limit, need + 2 * _MIB)
    return tb, cs_tile, int(vmem_limit)


def spr_module(x, params, *, batch_block=None):
    """Pallas implementation of SPRModule.forward.  x: (B, C, H, W), NCHW.

    Feeding x as bfloat16 halves HBM traffic; the kernel consumes it natively
    on the MXU with f32 accumulation."""
    B, C, H, W = x.shape
    assert H % 2 == 0 and W % 2 == 0, "even spatial dims required (AdaptiveAvgPool2d(2))"
    S = H * W
    CS = C * S

    w1, b1, w2, b2 = params["w1"], params["b1"], params["w2"], params["b2"]
    Cr = w1.shape[0]

    # ---- Fold (global + 2x2 adaptive) average pooling into fc1 (tiny, one-time).
    # PyTorch feature columns: [pool1: c] ++ [pool2: C + 4*c + k], k = 2*oh + ow.
    #   Wbig[c*S + s, r] = w1[r, c]/S + (4/S) * w1[r, C + 4*c + quad(s)]
    # so  x.reshape(B, C*S) @ Wbig + b1  ==  fc1(cat(pool1, pool2)).
    hh, hw = H // 2, W // 2
    w1pool = jnp.transpose(w1[:, :C]).astype(jnp.float32)                      # (C, Cr)
    w1quad = jnp.transpose(w1[:, C:].reshape(Cr, C, 4), (2, 1, 0)).astype(jnp.float32)  # (4, C, Cr)
    quad = ((jnp.arange(H) >= hh).astype(jnp.int32)[:, None] * 2
            + (jnp.arange(W) >= hw).astype(jnp.int32)[None, :]).reshape(S)     # (S,)
    wbig = (w1pool[:, None, :] * (1.0 / S)
            + jnp.transpose(w1quad[quad], (1, 0, 2)) * (4.0 / S))              # (C, S, Cr)
    wbig = wbig.reshape(CS, Cr).astype(x.dtype)

    b1_2d = b1.reshape(1, Cr).astype(jnp.float32)
    w2k = jnp.transpose(w2).astype(jnp.float32)                                # (Cr, C)
    b2_2d = b2.reshape(1, C).astype(jnp.float32)

    # ---- x: FREE reshape (contiguous NCHW -> (B, C*S)); lane-dense, single HBM pass.
    x2 = x.reshape(B, CS)

    tb, cs_tile, vmem_limit = _select_tiling(B, C, S, Cr, x.dtype.itemsize)
    if batch_block is not None:      # test hook (must be a multiple of 8 or == B)
        tb = batch_block
    n_b = pl.cdiv(B, tb)
    n_k = CS // cs_tile

    flops = 2 * B * CS * Cr + 2 * B * Cr * C
    bytes_accessed = (x2.size * x2.dtype.itemsize
                      + n_b * wbig.size * wbig.dtype.itemsize
                      + (Cr + Cr * C + C) * 4
                      + B * C * x.dtype.itemsize)

    out = pl.pallas_call(
        spr_kernel,
        out_shape=jax.ShapeDtypeStruct((B, C), x.dtype),
        grid_spec=pltpu.PrefetchScalarGridSpec(
            num_scalar_prefetch=0,
            grid=(n_b, n_k),
            in_specs=[
                pl.BlockSpec((tb, cs_tile), lambda b, k: (b, k)),   # x
                pl.BlockSpec((cs_tile, Cr), lambda b, k: (k, 0)),   # Wbig
                pl.BlockSpec((1, Cr), lambda b, k: (0, 0)),         # b1
                pl.BlockSpec((Cr, C), lambda b, k: (0, 0)),         # w2^T
                pl.BlockSpec((1, C), lambda b, k: (0, 0)),          # b2
            ],
            out_specs=pl.BlockSpec((tb, C), lambda b, k: (b, 0)),
            scratch_shapes=[pltpu.VMEM((tb, Cr), jnp.float32)],
        ),
        compiler_params=pltpu.CompilerParams(
            dimension_semantics=("parallel", "arbitrary"),
            vmem_limit_bytes=vmem_limit,
        ),
        cost_estimate=pl.CostEstimate(
            flops=int(flops),
            transcendentals=int(B * C),
            bytes_accessed=int(bytes_accessed),
        ),
    )(x2, wbig, b1_2d, w2k, b2_2d)
    return out.reshape(B, C, 1, 1)


def spr_reference(x, params):
    """Pure-JAX reference mirroring the PyTorch forward."""
    B, C, H, W = x.shape
    hh, hw = H // 2, W // 2
    pool1 = jnp.mean(x, axis=(2, 3))                                  # (B, C)
    pool2 = jnp.mean(x.reshape(B, C, 2, hh, 2, hw), axis=(3, 5))      # (B, C, 2, 2)
    feat = jnp.concatenate([pool1, pool2.reshape(B, 4 * C)], axis=1)  # (B, 5C)
    y1 = jnp.maximum(feat @ params["w1"].T + params["b1"], 0.0)
    y2 = y1 @ params["w2"].T + params["b2"]
    return jax.nn.sigmoid(y2).reshape(B, C, 1, 1)


def init_params(key, channels, reduction=16):
    reduced = max(channels // reduction, 1)
    k1, k2, k3, k4 = jax.random.split(key, 4)
    return {
        "w1": 0.1 * jax.random.normal(k1, (reduced, channels * 5), jnp.float32),
        "b1": 0.1 * jax.random.normal(k2, (reduced,), jnp.float32),
        "w2": 0.1 * jax.random.normal(k3, (channels, reduced), jnp.float32),
        "b2": 0.1 * jax.random.normal(k4, (channels,), jnp.float32),
    }


if __name__ == "__main__":
    B, C, H, W = 2, 64, 8, 8
    reduction = 16

    key = jax.random.PRNGKey(0)
    kp, kx, kx2 = jax.random.split(key, 3)
    params = init_params(kp, C, reduction)

    # Small demo shape (matches the module defaults).
    x = jax.random.normal(kx, (B, C, H, W), jnp.float32)
    out = jax.block_until_ready(spr_module(x, params))
    ref = spr_reference(x, params)
    assert out.shape == (B, C, 1, 1)
    assert jnp.allclose(out, ref, atol=2e-5, rtol=2e-5), "mismatch vs reference"

    # Awkward batch size: exercises the cdiv grid with a padded last batch block.
    x_b = jax.random.normal(kx2, (10, C, H, W), jnp.float32)
    out_b = jax.block_until_ready(spr_module(x_b, params, batch_block=8))
    ref_b = spr_reference(x_b, params)
    assert jnp.allclose(out_b, ref_b, atol=2e-5, rtol=2e-5), "mismatch (padded block)"

    print("KERNEL_OK")
</pallas_src>

<mosaic_0001>
module attributes {stable_mosaic.version = 11 : i64} {
  func.func @spr_kernel(%arg0: i32, %arg1: i32, %arg2: memref<2x4096xf32, #tpu.memory_space<vmem>>, %arg3: memref<4096x4xf32, #tpu.memory_space<vmem>>, %arg4: memref<1x4xf32, #tpu.memory_space<vmem>>, %arg5: memref<4x64xf32, #tpu.memory_space<vmem>>, %arg6: memref<1x64xf32, #tpu.memory_space<vmem>>, %arg7: memref<2x64xf32, #tpu.memory_space<vmem>>, %arg8: memref<2x4xf32, #tpu.memory_space<vmem>>) attributes {dimension_semantics = [#tpu.dimension_semantics<parallel>, #tpu.dimension_semantics<arbitrary>], iteration_bounds = array<i64: 1, 1>, scalar_prefetch = 0 : i64, scratch_operands = 1 : i64, tpu.core_type = #tpu.core_type<tc>, window_params = [{transform_indices = @transform_0, window_bounds = array<i64: 2, 4096>}, {transform_indices = @transform_1, window_bounds = array<i64: 4096, 4>}, {pipeline_mode = #tpu.pipeline_mode<synchronous>, transform_indices = @transform_2, window_bounds = array<i64: 1, 4>}, {pipeline_mode = #tpu.pipeline_mode<synchronous>, transform_indices = @transform_3, window_bounds = array<i64: 4, 64>}, {pipeline_mode = #tpu.pipeline_mode<synchronous>, transform_indices = @transform_4, window_bounds = array<i64: 1, 64>}, {transform_indices = @transform_5, window_bounds = array<i64: 2, 64>}]} {
    %c0_i32 = arith.constant 0 : i32
    %0 = arith.cmpi eq, %arg1, %c0_i32 : i32
    %1 = arith.extui %0 : i1 to i32
    %c0_i32_0 = arith.constant 0 : i32
    %2 = arith.cmpi ne, %1, %c0_i32_0 : i32
    scf.if %2 {
      %cst_21 = arith.constant 0.000000e+00 : f32
      %28 = vector.broadcast %cst_21 : f32 to vector<2x4xf32>
      %c0_22 = arith.constant 0 : index
      %c0_23 = arith.constant 0 : index
      %29 = vector.load %arg8[%c0_22, %c0_23] : memref<2x4xf32, #tpu.memory_space<vmem>>, vector<2x4xf32>
      tpu.vector_store %arg8[%c0_22, %c0_23], %28 {strides = array<i32>} : memref<2x4xf32, #tpu.memory_space<vmem>>, vector<2x4xf32>,
    } else {
    }
    %c0 = arith.constant 0 : index
    %c0_1 = arith.constant 0 : index
    %3 = vector.load %arg8[%c0, %c0_1] : memref<2x4xf32, #tpu.memory_space<vmem>>, vector<2x4xf32>
    %c0_2 = arith.constant 0 : index
    %c0_3 = arith.constant 0 : index
    %4 = vector.load %arg2[%c0_2, %c0_3] : memref<2x4096xf32, #tpu.memory_space<vmem>>, vector<2x4096xf32>
    %c0_4 = arith.constant 0 : index
    %c0_5 = arith.constant 0 : index
    %5 = vector.load %arg3[%c0_4, %c0_5] : memref<4096x4xf32, #tpu.memory_space<vmem>>, vector<4096x4xf32>
    %cst = arith.constant dense<0.000000e+00> : vector<2x4xf32>
    %6 = tpu.matmul %4, %5, %cst {dimension_numbers = #tpu.dot_dimension_numbers<[1], [0], [0], [1], [0, 0, 1, 1], [], []>} : vector<2x4096xf32>, vector<4096x4xf32>, vector<2x4xf32> -> vector<2x4xf32>
    %7 = arith.addf %3, %6 : vector<2x4xf32>
    %c0_6 = arith.constant 0 : index
    %c0_7 = arith.constant 0 : index
    %8 = vector.load %arg8[%c0_6, %c0_7] : memref<2x4xf32, #tpu.memory_space<vmem>>, vector<2x4xf32>
    tpu.vector_store %arg8[%c0_6, %c0_7], %7 {strides = array<i32>} : memref<2x4xf32, #tpu.memory_space<vmem>>, vector<2x4xf32>,
    %c0_8 = arith.constant 0 : index
    %c0_9 = arith.constant 0 : index
    %9 = vector.load %arg8[%c0_8, %c0_9] : memref<2x4xf32, #tpu.memory_space<vmem>>, vector<2x4xf32>
    %c0_10 = arith.constant 0 : index
    %c0_11 = arith.constant 0 : index
    %10 = vector.load %arg4[%c0_10, %c0_11] : memref<1x4xf32, #tpu.memory_space<vmem>>, vector<1x4xf32>
    %11 = vector.broadcast %10 : vector<1x4xf32> to vector<2x4xf32>
    %12 = arith.addf %9, %11 : vector<2x4xf32>
    %cst_12 = arith.constant 0.000000e+00 : f32
    %13 = vector.broadcast %cst_12 : f32 to vector<2x4xf32>
    %14 = arith.maximumf %12, %13 : vector<2x4xf32>
    %c0_13 = arith.constant 0 : index
    %c0_14 = arith.constant 0 : index
    %15 = vector.load %arg5[%c0_13, %c0_14] : memref<4x64xf32, #tpu.memory_space<vmem>>, vector<4x64xf32>
    %cst_15 = arith.constant dense<0.000000e+00> : vector<2x64xf32>
    %16 = tpu.matmul %14, %15, %cst_15 {dimension_numbers = #tpu.dot_dimension_numbers<[1], [0], [0], [1], [0, 0, 1, 1], [], []>} : vector<2x4xf32>, vector<4x64xf32>, vector<2x64xf32> -> vector<2x64xf32>
    %c0_16 = arith.constant 0 : index
    %c0_17 = arith.constant 0 : index
    %17 = vector.load %arg6[%c0_16, %c0_17] : memref<1x64xf32, #tpu.memory_space<vmem>>, vector<1x64xf32>
    %18 = vector.broadcast %17 : vector<1x64xf32> to vector<2x64xf32>
    %19 = arith.addf %16, %18 : vector<2x64xf32>
    %20 = arith.negf %19 : vector<2x64xf32>
    %21 = math.exp %20 : vector<2x64xf32>
    %cst_18 = arith.constant 1.000000e+00 : f32
    %22 = vector.broadcast %cst_18 : f32 to vector<2x64xf32>
    %23 = arith.addf %22, %21 : vector<2x64xf32>
    %24 = arith.divf %22, %23 : vector<2x64xf32>
    %c0_i32_19 = arith.constant 0 : i32
    %25 = arith.cmpi eq, %arg1, %c0_i32_19 : i32
    %26 = arith.extui %25 : i1 to i32
    %c0_i32_20 = arith.constant 0 : i32
    %27 = arith.cmpi ne, %26, %c0_i32_20 : i32
    scf.if %27 {
      %c0_21 = arith.constant 0 : index
      %c0_22 = arith.constant 0 : index
      %28 = vector.load %arg7[%c0_21, %c0_22] : memref<2x64xf32, #tpu.memory_space<vmem>>, vector<2x64xf32>
      tpu.vector_store %arg7[%c0_21, %c0_22], %24 {strides = array<i32>} : memref<2x64xf32, #tpu.memory_space<vmem>>, vector<2x64xf32>,
    } else {
    }
    return
  }
  func.func @transform_0(%arg0: i32, %arg1: i32) -> (i32, i32) {
    %c0_i32 = arith.constant 0 : i32
    return %arg0, %arg1 : i32, i32
  }
  func.func @transform_1(%arg0: i32, %arg1: i32) -> (i32, i32) {
    %c0_i32 = arith.constant 0 : i32
    %c0_i32_0 = arith.constant 0 : i32
    return %arg1, %c0_i32 : i32, i32
  }
  func.func @transform_2(%arg0: i32, %arg1: i32) -> (i32, i32) {
    %c0_i32 = arith.constant 0 : i32
    %c0_i32_0 = arith.constant 0 : i32
    %c0_i32_1 = arith.constant 0 : i32
    return %c0_i32, %c0_i32_0 : i32, i32
  }
  func.func @transform_3(%arg0: i32, %arg1: i32) -> (i32, i32) {
    %c0_i32 = arith.constant 0 : i32
    %c0_i32_0 = arith.constant 0 : i32
    %c0_i32_1 = arith.constant 0 : i32
    return %c0_i32, %c0_i32_0 : i32, i32
  }
  func.func @transform_4(%arg0: i32, %arg1: i32) -> (i32, i32) {
    %c0_i32 = arith.constant 0 : i32
    %c0_i32_0 = arith.constant 0 : i32
    %c0_i32_1 = arith.constant 0 : i32
    return %c0_i32, %c0_i32_0 : i32, i32
  }
  func.func @transform_5(%arg0: i32, %arg1: i32) -> (i32, i32) {
    %c0_i32 = arith.constant 0 : i32
    %c0_i32_0 = arith.constant 0 : i32
    return %arg0, %c0_i32 : i32, i32
  }
}

</mosaic_0001>

<bundles_post_ra>
// kernel: tpu_custom_call.1
= control target key start
LH: loop header
LB: loop body
LE: loop exit
PB: predicated region body
PF: predicated region fallthrough
CT: control target
= control target key end

     0   :  { %s3040_s0 = inlined_call_operand.vmem [shape: f32[2,4096], index: 0, kind: input, shape index: {}]   ;;  %s3041_s1 = inlined_call_operand.vmem [shape: f32[4096,4], index: 1, kind: input, shape index: {}]   ;;  %s3042_s2 = inlined_call_operand.vmem [shape: f32[1,4], index: 2, kind: input, shape index: {}]   ;;  %s3043_s3 = inlined_call_operand.vmem [shape: f32[4,64], index: 3, kind: input, shape index: {}]   ;;  %s3044_s4 = inlined_call_operand.vmem [shape: f32[1,64], index: 4, kind: input, shape index: {}]   ;;  %s3045_s5 = inlined_call_operand.hbm [shape: f32[2,64], index: 5, kind: output, shape index: {}]  }
   0x1   :  { %v51_v0 = vld [vmem:[%s3041_s1 + $0x78] sm:$0xff]  ;;  %v50_v2 = vld [vmem:[%s3041_s1 + $0x70] sm:$0xff]  ;;  %v49_v6 = vld [vmem:[%s3041_s1 + $0x68] sm:$0xff] }
   0x2   :  { %v83_v1 = vld [vmem:[%s3041_s1 + $0x178] sm:$0xff]  ;;  %629 = vmatpush.msra.mxu0 %v51_v0  ;;  %v82_v4 = vld [vmem:[%s3041_s1 + $0x170] sm:$0xff]  ;;  %v81_v8 = vld [vmem:[%s3041_s1 + $0x168] sm:$0xff] }
   0x3   :  { %669 = vmatpush.msra.mxu2 %v83_v1  ;;  %v67_v3 = vld [vmem:[%s3041_s1 + $0xf8] sm:$0xff]  ;;  %v66_v7 = vld [vmem:[%s3041_s1 + $0xf0] sm:$0xff]  ;;  %v65_v10 = vld [vmem:[%s3041_s1 + $0xe8] sm:$0xff] }
   0x4   :  { %v99_v5 = vld [vmem:[%s3041_s1 + $0x1f8] sm:$0xff]  ;;  %649 = vmatpush.msra.mxu1 %v67_v3  ;;  %630 = vmatpush.msra.mxu0 %v50_v2  ;;  %v98_v9 = vld [vmem:[%s3041_s1 + $0x1f0] sm:$0xff]  ;;  %v48_v11 = vld [vmem:[%s3041_s1 + $0x60] sm:$0xff] }
   0x5   :  { %689 = vmatpush.msra.mxu3 %v99_v5  ;;  %670 = vmatpush.msra.mxu2 %v82_v4  ;;  %v80_v12 = vld [vmem:[%s3041_s1 + $0x160] sm:$0xff]  ;;  %v97_v13 = vld [vmem:[%s3041_s1 + $0x1e8] sm:$0xff]  ;;  %v47_v16 = vld [vmem:[%s3041_s1 + $0x58] sm:$0xff] }
   0x6   :  { %650 = vmatpush.msra.mxu1 %v66_v7  ;;  %631 = vmatpush.msra.mxu0 %v49_v6  ;;  %v64_v14 = vld [vmem:[%s3041_s1 + $0xe0] sm:$0xff]  ;;  %v79_v17 = vld [vmem:[%s3041_s1 + $0x158] sm:$0xff]  ;;  %v46_v20 = vld [vmem:[%s3041_s1 + $0x50] sm:$0xff] }
   0x7   :  { %690 = vmatpush.msra.mxu3 %v98_v9  ;;  %671 = vmatpush.msra.mxu2 %v81_v8  ;;  %v96_v15 = vld [vmem:[%s3041_s1 + $0x1e0] sm:$0xff]  ;;  %v63_v18 = vld [vmem:[%s3041_s1 + $0xd8] sm:$0xff]  ;;  %v78_v21 = vld [vmem:[%s3041_s1 + $0x150] sm:$0xff] }
   0x8   :  { %651 = vmatpush.msra.mxu1 %v65_v10  ;;  %632 = vmatpush.msra.mxu0 %v48_v11  ;;  %v95_v19 = vld [vmem:[%s3041_s1 + $0x1d8] sm:$0xff]  ;;  %v62_v22 = vld [vmem:[%s3041_s1 + $0xd0] sm:$0xff]  ;;  %v45_v24 = vld [vmem:[%s3041_s1 + $0x48] sm:$0xff] }
   0x9   :  { %691 = vmatpush.msra.mxu3 %v97_v13  ;;  %672 = vmatpush.msra.mxu2 %v80_v12  ;;  %v94_v23 = vld [vmem:[%s3041_s1 + $0x1d0] sm:$0xff]  ;;  %v77_v25 = vld [vmem:[%s3041_s1 + $0x148] sm:$0xff]  ;;  %v44_v28 = vld [vmem:[%s3041_s1 + $0x40] sm:$0xff] }
   0xa   :  { %652 = vmatpush.msra.mxu1 %v64_v14  ;;  %633 = vmatpush.msra.mxu0 %v47_v16  ;;  %v61_v26 = vld [vmem:[%s3041_s1 + $0xc8] sm:$0xff]  ;;  %v76_v29 = vld [vmem:[%s3041_s1 + $0x140] sm:$0xff]  ;;  %v43_v32 = vld [vmem:[%s3041_s1 + $0x38] sm:$0xff] }
   0xb   :  { %692 = vmatpush.msra.mxu3 %v96_v15  ;;  %673 = vmatpush.msra.mxu2 %v79_v17  ;;  %v93_v27 = vld [vmem:[%s3041_s1 + $0x1c8] sm:$0xff]  ;;  %v60_v30 = vld [vmem:[%s3041_s1 + $0xc0] sm:$0xff]  ;;  %v75_v33 = vld [vmem:[%s3041_s1 + $0x138] sm:$0xff] }
   0xc   :  { %653 = vmatpush.msra.mxu1 %v63_v18  ;;  %634 = vmatpush.msra.mxu0 %v46_v20  ;;  %v92_v31 = vld [vmem:[%s3041_s1 + $0x1c0] sm:$0xff]  ;;  %v59_v34 = vld [vmem:[%s3041_s1 + $0xb8] sm:$0xff]  ;;  %v42_v36 = vld [vmem:[%s3041_s1 + $0x30] sm:$0xff] }
   0xd   :  { %693 = vmatpush.msra.mxu3 %v95_v19  ;;  %674 = vmatpush.msra.mxu2 %v78_v21  ;;  %v91_v35 = vld [vmem:[%s3041_s1 + $0x1b8] sm:$0xff]  ;;  %v74_v37 = vld [vmem:[%s3041_s1 + $0x130] sm:$0xff]  ;;  %v41_v40 = vld [vmem:[%s3041_s1 + $0x28] sm:$0xff] }
   0xe   :  { %654 = vmatpush.msra.mxu1 %v62_v22  ;;  %635 = vmatpush.msra.mxu0 %v45_v24  ;;  %v58_v38 = vld [vmem:[%s3041_s1 + $0xb0] sm:$0xff]  ;;  %v73_v41 = vld [vmem:[%s3041_s1 + $0x128] sm:$0xff]  ;;  %v40_v44 = vld [vmem:[%s3041_s1 + $0x20] sm:$0xff] }
   0xf   :  { %694 = vmatpush.msra.mxu3 %v94_v23  ;;  %675 = vmatpush.msra.mxu2 %v77_v25  ;;  %v90_v39 = vld [vmem:[%s3041_s1 + $0x1b0] sm:$0xff]  ;;  %v57_v42 = vld [vmem:[%s3041_s1 + $0xa8] sm:$0xff]  ;;  %v72_v45 = vld [vmem:[%s3041_s1 + $0x120] sm:$0xff] }
  0x10   :  { %655 = vmatpush.msra.mxu1 %v61_v26  ;;  %636 = vmatpush.msra.mxu0 %v44_v28  ;;  %v89_v43 = vld [vmem:[%s3041_s1 + $0x1a8] sm:$0xff]  ;;  %v56_v46 = vld [vmem:[%s3041_s1 + $0xa0] sm:$0xff]  ;;  %v39_v48 = vld [vmem:[%s3041_s1 + $0x18] sm:$0xff] }
  0x11   :  { %695 = vmatpush.msra.mxu3 %v93_v27  ;;  %676 = vmatpush.msra.mxu2 %v76_v29  ;;  %v88_v47 = vld [vmem:[%s3041_s1 + $0x1a0] sm:$0xff]  ;;  %v71_v49 = vld [vmem:[%s3041_s1 + $0x118] sm:$0xff]  ;;  %v38_v52 = vld [vmem:[%s3041_s1 + $0x10] sm:$0xff] }
  0x12   :  { %656 = vmatpush.msra.mxu1 %v60_v30  ;;  %637 = vmatpush.msra.mxu0 %v43_v32  ;;  %v55_v50 = vld [vmem:[%s3041_s1 + $0x98] sm:$0xff]  ;;  %v70_v53 = vld [vmem:[%s3041_s1 + $0x110] sm:$0xff]  ;;  %v37_v56 = vld [vmem:[%s3041_s1 + $0x8] sm:$0xff] }
  0x13   :  { %696 = vmatpush.msra.mxu3 %v92_v31  ;;  %677 = vmatpush.msra.mxu2 %v75_v33  ;;  %v87_v51 = vld [vmem:[%s3041_s1 + $0x198] sm:$0xff]  ;;  %v54_v54 = vld [vmem:[%s3041_s1 + $0x90] sm:$0xff]  ;;  %v69_v57 = vld [vmem:[%s3041_s1 + $0x108] sm:$0xff] }
  0x14   :  { %657 = vmatpush.msra.mxu1 %v59_v34  ;;  %638 = vmatpush.msra.mxu0 %v42_v36  ;;  %v86_v55 = vld [vmem:[%s3041_s1 + $0x190] sm:$0xff]  ;;  %v53_v58 = vld [vmem:[%s3041_s1 + $0x88] sm:$0xff]  ;;  %v36_v60 = vld [vmem:[%s3041_s1] sm:$0xff] }
  0x15   :  { %697 = vmatpush.msra.mxu3 %v91_v35  ;;  %678 = vmatpush.msra.mxu2 %v74_v37  ;;  %v85_v59 = vld [vmem:[%s3041_s1 + $0x188] sm:$0xff]  ;;  %v68_v61 = vld [vmem:[%s3041_s1 + $0x100] sm:$0xff]  ;;  %v115_v62 = vld [vmem:[%s3041_s1 + $0x278] sm:$0xff] }
  0x16   :  { %658 = vmatpush.msra.mxu1 %v58_v38  ;;  %639 = vmatpush.msra.mxu0 %v41_v40  ;;  %v147_v63 = vld [vmem:[%s3041_s1 + $0x378] sm:$0xff]  ;;  %v52_v0 = vld [vmem:[%s3041_s1 + $0x80] sm:$0xff]  ;;  %v114_v2 = vld [vmem:[%s3041_s1 + $0x270] sm:$0xff] }
  0x17   :  { %698 = vmatpush.msra.mxu3 %v90_v39  ;;  %679 = vmatpush.msra.mxu2 %v73_v41  ;;  %v84_v1 = vld [vmem:[%s3041_s1 + $0x180] sm:$0xff]  ;;  %v131_v3 = vld [vmem:[%s3041_s1 + $0x2f8] sm:$0xff]  ;;  %v146_v4 = vld [vmem:[%s3041_s1 + $0x370] sm:$0xff] }
  0x18   :  { %659 = vmatpush.msra.mxu1 %v57_v42  ;;  %640 = vmatpush.msra.mxu0 %v40_v44  ;;  %v163_v5 = vld [vmem:[%s3041_s1 + $0x3f8] sm:$0xff]  ;;  %v113_v6 = vld [vmem:[%s3041_s1 + $0x268] sm:$0xff]  ;;  %v130_v7 = vld [vmem:[%s3041_s1 + $0x2f0] sm:$0xff] }
  0x19   :  { %699 = vmatpush.msra.mxu3 %v89_v43  ;;  %680 = vmatpush.msra.mxu2 %v72_v45  ;;  %v145_v8 = vld [vmem:[%s3041_s1 + $0x368] sm:$0xff]  ;;  %v162_v9 = vld [vmem:[%s3041_s1 + $0x3f0] sm:$0xff]  ;;  %v112_v10 = vld [vmem:[%s3041_s1 + $0x260] sm:$0xff] }
  0x1a   :  { %660 = vmatpush.msra.mxu1 %v56_v46  ;;  %641 = vmatpush.msra.mxu0 %v39_v48  ;;  %v129_v11 = vld [vmem:[%s3041_s1 + $0x2e8] sm:$0xff]  ;;  %v144_v12 = vld [vmem:[%s3041_s1 + $0x360] sm:$0xff]  ;;  %v111_v14 = vld [vmem:[%s3041_s1 + $0x258] sm:$0xff] }
  0x1b   :  { %700 = vmatpush.msra.mxu3 %v88_v47  ;;  %681 = vmatpush.msra.mxu2 %v71_v49  ;;  %v161_v13 = vld [vmem:[%s3041_s1 + $0x3e8] sm:$0xff]  ;;  %v128_v15 = vld [vmem:[%s3041_s1 + $0x2e0] sm:$0xff]  ;;  %v143_v16 = vld [vmem:[%s3041_s1 + $0x358] sm:$0xff] }
  0x1c   :  { %661 = vmatpush.msra.mxu1 %v55_v50  ;;  %642 = vmatpush.msra.mxu0 %v38_v52  ;;  %v160_v17 = vld [vmem:[%s3041_s1 + $0x3e0] sm:$0xff]  ;;  %v110_v18 = vld [vmem:[%s3041_s1 + $0x250] sm:$0xff]  ;;  %v127_v19 = vld [vmem:[%s3041_s1 + $0x2d8] sm:$0xff] }
  0x1d   :  { %701 = vmatpush.msra.mxu3 %v87_v51  ;;  %682 = vmatpush.msra.mxu2 %v70_v53  ;;  %v142_v20 = vld [vmem:[%s3041_s1 + $0x350] sm:$0xff]  ;;  %v159_v21 = vld [vmem:[%s3041_s1 + $0x3d8] sm:$0xff]  ;;  %v28_v22 = vld [vmem:[%s3040_s0] sm:$0xff] }
  0x1e   :  { %662 = vmatpush.msra.mxu1 %v54_v54  ;;  %643 = vmatpush.msra.mxu0 %v37_v56  ;;  %v109_v23 = vld [vmem:[%s3041_s1 + $0x248] sm:$0xff]  ;;  %v126_v24 = vld [vmem:[%s3041_s1 + $0x2d0] sm:$0xff]  ;;  %556 = vst [vmem:[#allocation1] ss:$4 sm:$0xff] %v28_v22  ;;  %v108_v27 = vld [vmem:[%s3041_s1 + $0x240] sm:$0xff] }
  0x1f   :  { %702 = vmatpush.msra.mxu3 %v86_v55  ;;  %683 = vmatpush.msra.mxu2 %v69_v57  ;;  %v141_v25 = vld [vmem:[%s3041_s1 + $0x348] sm:$0xff]  ;;  %v158_v26 = vld [vmem:[%s3041_s1 + $0x3d0] sm:$0xff]  ;;  %v140_v29 = vld [vmem:[%s3041_s1 + $0x340] sm:$0xff] }
  0x20   :  { %663 = vmatpush.msra.mxu1 %v53_v58  ;;  %644 = vmatpush.msra.mxu0 %v36_v60  ;;  %v125_v28 = vld [vmem:[%s3041_s1 + $0x2c8] sm:$0xff]  ;;  %v107_v31 = vld [vmem:[%s3041_s1 + $0x238] sm:$0xff]  ;;  %v124_v32 = vld [vmem:[%s3041_s1 + $0x2c0] sm:$0xff] }
  0x21   :  { %703 = vmatpush.msra.mxu3 %v85_v59  ;;  %684 = vmatpush.msra.mxu2 %v68_v61  ;;  %v157_v30 = vld [vmem:[%s3041_s1 + $0x3c8] sm:$0xff]  ;;  %v139_v33 = vld [vmem:[%s3041_s1 + $0x338] sm:$0xff]  ;;  %v156_v34 = vld [vmem:[%s3041_s1 + $0x3c0] sm:$0xff] }
  0x22   :  { %709 = vmatpush.msrb.mxu0 %v115_v62  ;;  %664 = vmatpush.msra.mxu1 %v52_v0  ;;  %v106_v35 = vld [vmem:[%s3041_s1 + $0x230] sm:$0xff]  ;;  %v123_v36 = vld [vmem:[%s3041_s1 + $0x2b8] sm:$0xff]  ;;  %v29_v39 = vld [vmem:[%s3040_s0 + $0x8] sm:$0xff] }
  0x23   :  { %749 = vmatpush.msrb.mxu2 %v147_v63  ;;  %704 = vmatpush.msra.mxu3 %v84_v1  ;;  %v138_v37 = vld [vmem:[%s3041_s1 + $0x330] sm:$0xff]  ;;  %v155_v38 = vld [vmem:[%s3041_s1 + $0x3b8] sm:$0xff]  ;;  %v105_v40 = vld [vmem:[%s3041_s1 + $0x228] sm:$0xff]  ;;  %558 = vst [vmem:[#allocation1 + $0x20] ss:$4 sm:$0xff] %v29_v39 }
  0x24   :  { %710 = vmatpush.msrb.mxu0 %v114_v2  ;;  %729 = vmatpush.msrb.mxu1 %v131_v3  ;;  %v122_v41 = vld [vmem:[%s3041_s1 + $0x2b0] sm:$0xff]  ;;  %v137_v43 = vld [vmem:[%s3041_s1 + $0x328] sm:$0xff]  ;;  %v104_v49 = vld [vmem:[%s3041_s1 + $0x220] sm:$0xff] }
  0x25   :  { %750 = vmatpush.msrb.mxu2 %v146_v4  ;;  %769 = vmatpush.msrb.mxu3 %v163_v5  ;;  %v30_v42 = vld [vmem:[%s3040_s0 + $0x10] sm:$0xff]  ;;  %v1745_v45 = vld.sshfl [vmem:[#allocation1] sm:$0xff pattern:$0x73625140]  ;;  %v121_v50 = vld [vmem:[%s3041_s1 + $0x2a8] sm:$0xff] }
  0x26   :  { %711 = vmatpush.msrb.mxu0 %v113_v6  ;;  %730 = vmatpush.msrb.mxu1 %v130_v7  ;;  %v561_v44 = vld.sshfl [vmem:[#allocation1 + $0x10] sm:$0xff pattern:$0x73625140]  ;;  %v1747_v46 = vld.sshfl [vmem:[#allocation1 + $0x18] sm:$0xff pattern:$0x73625140] }
  0x27   :  { %751 = vmatpush.msrb.mxu2 %v145_v8  ;;  %770 = vmatpush.msrb.mxu3 %v162_v9  ;;  %v1749_v47 = vld.sshfl [vmem:[#allocation1 + $0x8] sm:$0xff pattern:$0x73625140]  ;;  %v154_v48 = vld [vmem:[%s3041_s1 + $0x3b0] sm:$0xff]  ;;  %v136_v51 = vld [vmem:[%s3041_s1 + $0x320] sm:$0xff] }
  0x28   :  { %712 = vmatpush.msrb.mxu0 %v112_v10  ;;  %731 = vmatpush.msrb.mxu1 %v129_v11  ;;  %567 = vst [vmem:[#allocation1] ss:$4 sm:$0xff] %v30_v42  ;;  %v153_v52 = vld [vmem:[%s3041_s1 + $0x3a8] sm:$0xff]  ;;  %v103_v53 = vld [vmem:[%s3041_s1 + $0x218] sm:$0xff]  ;;  %v120_v54 = vld [vmem:[%s3041_s1 + $0x2a0] sm:$0xff] }
  0x29   :  { %752 = vmatpush.msrb.mxu2 %v144_v12  ;;  %771 = vmatpush.msrb.mxu3 %v161_v13  ;;  %v135_v55 = vld [vmem:[%s3041_s1 + $0x318] sm:$0xff]  ;;  %v152_v56 = vld [vmem:[%s3041_s1 + $0x3a0] sm:$0xff]  ;;  %v102_v57 = vld [vmem:[%s3041_s1 + $0x210] sm:$0xff] }
  0x2a   :  { %713 = vmatpush.msrb.mxu0 %v111_v14  ;;  %732 = vmatpush.msrb.mxu1 %v128_v15  ;;  %v119_v58 = vld [vmem:[%s3041_s1 + $0x298] sm:$0xff]  ;;  %v1787_v60 = vld.sshfl [vmem:[#allocation1 + $0x30] sm:$0xff pattern:$0x73625140]  ;;  %v101_v2 = vld [vmem:[%s3041_s1 + $0x208] sm:$0xff] }
  0x2b   :  { %753 = vmatpush.msrb.mxu2 %v143_v16  ;;  %772 = vmatpush.msrb.mxu3 %v160_v17  ;;  %v31_v59 = vld [vmem:[%s3040_s0 + $0x18] sm:$0xff]  ;;  %v1789_v61 = vld.sshfl [vmem:[#allocation1 + $0x20] sm:$0xff pattern:$0x73625140]  ;;  %v134_v0 = vld [vmem:[%s3041_s1 + $0x310] sm:$0xff] }
  0x2c   :  { %714 = vmatpush.msrb.mxu0 %v110_v18  ;;  %733 = vmatpush.msrb.mxu1 %v127_v19  ;;  %v1791_v62 = vld.sshfl [vmem:[#allocation1 + $0x38] sm:$0xff pattern:$0x73625140]  ;;  %v1793_v63 = vld.sshfl [vmem:[#allocation1 + $0x28] sm:$0xff pattern:$0x73625140] }
  0x2d   :  { %754 = vmatpush.msrb.mxu2 %v142_v20  ;;  %773 = vmatpush.msrb.mxu3 %v159_v21  ;;  %v151_v1 = vld [vmem:[%s3041_s1 + $0x398] sm:$0xff]  ;;  %568 = vst [vmem:[#allocation1 + $0x20] ss:$4 sm:$0xff] %v31_v59  ;;  %v118_v3 = vld [vmem:[%s3041_s1 + $0x290] sm:$0xff]  ;;  %v133_v4 = vld [vmem:[%s3041_s1 + $0x308] sm:$0xff] }
  0x2e   :  { %715 = vmatpush.msrb.mxu0 %v109_v23  ;;  %734 = vmatpush.msrb.mxu1 %v126_v24  ;;  %v150_v5 = vld [vmem:[%s3041_s1 + $0x390] sm:$0xff]  ;;  %v100_v6 = vld [vmem:[%s3041_s1 + $0x200] sm:$0xff]  ;;  %v117_v7 = vld [vmem:[%s3041_s1 + $0x288] sm:$0xff] }
  0x2f   :  { %755 = vmatpush.msrb.mxu2 %v141_v25  ;;  %774 = vmatpush.msrb.mxu3 %v158_v26  ;;  %v132_v8 = vld [vmem:[%s3041_s1 + $0x300] sm:$0xff]  ;;  %v149_v9 = vld [vmem:[%s3041_s1 + $0x388] sm:$0xff]  ;;  %v179_v10 = vld [vmem:[%s3041_s1 + $0x478] sm:$0xff] }
  0x30   :  { %716 = vmatpush.msrb.mxu0 %v108_v27  ;;  %735 = vmatpush.msrb.mxu1 %v125_v28  ;;  %v211_v11 = vld [vmem:[%s3041_s1 + $0x578] sm:$0xff]  ;;  %v116_v12 = vld [vmem:[%s3041_s1 + $0x280] sm:$0xff]  ;;  %v178_v14 = vld [vmem:[%s3041_s1 + $0x470] sm:$0xff] }
  0x31   :  { %756 = vmatpush.msrb.mxu2 %v140_v29  ;;  %775 = vmatpush.msrb.mxu3 %v157_v30  ;;  %v148_v13 = vld [vmem:[%s3041_s1 + $0x380] sm:$0xff]  ;;  %v195_v15 = vld [vmem:[%s3041_s1 + $0x4f8] sm:$0xff]  ;;  %v210_v16 = vld [vmem:[%s3041_s1 + $0x570] sm:$0xff] }
  0x32   :  { %717 = vmatpush.msrb.mxu0 %v107_v31  ;;  %736 = vmatpush.msrb.mxu1 %v124_v32  ;;  %v227_v17 = vld [vmem:[%s3041_s1 + $0x5f8] sm:$0xff]  ;;  %v177_v18 = vld [vmem:[%s3041_s1 + $0x468] sm:$0xff]  ;;  %v194_v19 = vld [vmem:[%s3041_s1 + $0x4f0] sm:$0xff] }
  0x33   :  { %757 = vmatpush.msrb.mxu2 %v139_v33  ;;  %776 = vmatpush.msrb.mxu3 %v156_v34  ;;  %v209_v20 = vld [vmem:[%s3041_s1 + $0x568] sm:$0xff]  ;;  %v226_v21 = vld [vmem:[%s3041_s1 + $0x5f0] sm:$0xff]  ;;  %v176_v22 = vld [vmem:[%s3041_s1 + $0x460] sm:$0xff] }
  0x34   :  { %718 = vmatpush.msrb.mxu0 %v106_v35  ;;  %737 = vmatpush.msrb.mxu1 %v123_v36  ;;  %v193_v23 = vld [vmem:[%s3041_s1 + $0x4e8] sm:$0xff]  ;;  %v208_v24 = vld [vmem:[%s3041_s1 + $0x560] sm:$0xff]  ;;  %v1875_v26 = vld.sshfl [vmem:[#allocation1 + $0x10] sm:$0xff pattern:$0x73625140] }
  0x35   :  { %758 = vmatpush.msrb.mxu2 %v138_v37  ;;  %777 = vmatpush.msrb.mxu3 %v155_v38  ;;  %v1873_v25 = vld.sshfl [vmem:[#allocation1] sm:$0xff pattern:$0x73625140]  ;;  %v1877_v27 = vld.sshfl [vmem:[#allocation1 + $0x8] sm:$0xff pattern:$0x73625140] }
  0x36   :  { %719 = vmatpush.msrb.mxu0 %v105_v40  ;;  %738 = vmatpush.msrb.mxu1 %v122_v41  ;;  %v225_v28 = vld [vmem:[%s3041_s1 + $0x5e8] sm:$0xff]  ;;  %v32_v29 = vld [vmem:[%s3040_s0 + $0x20] sm:$0xff]  ;;  %v1885_v30 = vld.sshfl [vmem:[#allocation1 + $0x18] sm:$0xff pattern:$0x73625140] }
  0x37   :  { %759 = vmatpush.msrb.mxu2 %v137_v43  ;;  %778 = vmatpush.msrb.mxu3 %v154_v48  ;;  %v175_v31 = vld [vmem:[%s3041_s1 + $0x458] sm:$0xff]  ;;  %v192_v32 = vld [vmem:[%s3041_s1 + $0x4e0] sm:$0xff]  ;;  %577 = vst [vmem:[#allocation1] ss:$4 sm:$0xff] %v32_v29  ;;  %v174_v35 = vld [vmem:[%s3041_s1 + $0x450] sm:$0xff] }
  0x38   :  { %720 = vmatpush.msrb.mxu0 %v104_v49  ;;  %739 = vmatpush.msrb.mxu1 %v121_v50  ;;  %v207_v33 = vld [vmem:[%s3041_s1 + $0x558] sm:$0xff]  ;;  %v224_v34 = vld [vmem:[%s3041_s1 + $0x5e0] sm:$0xff] }
  0x39   :  { %760 = vmatpush.msrb.mxu2 %v136_v51  ;;  %779 = vmatpush.msrb.mxu3 %v153_v52  ;;  %v191_v36 = vld [vmem:[%s3041_s1 + $0x4d8] sm:$0xff] }
  0x3a   :  { %721 = vmatpush.msrb.mxu0 %v103_v53  ;;  %740 = vmatpush.msrb.mxu1 %v120_v54 }
  0x3b   :  { %761 = vmatpush.msrb.mxu2 %v135_v55  ;;  %780 = vmatpush.msrb.mxu3 %v152_v56 }
  0x3c   :  { %722 = vmatpush.msrb.mxu0 %v102_v57  ;;  %741 = vmatpush.msrb.mxu1 %v119_v58 }
  0x3d   :  { %762 = vmatpush.msrb.mxu2 %v134_v0  ;;  %781 = vmatpush.msrb.mxu3 %v151_v1 }
  0x3e   :  { %723 = vmatpush.msrb.mxu0 %v101_v2  ;;  %742 = vmatpush.msrb.mxu1 %v118_v3 }
  0x3f   :  { %763 = vmatpush.msrb.mxu2 %v133_v4  ;;  %782 = vmatpush.msrb.mxu3 %v150_v5 }
  0x40   :  { %685 = vmatmul.f32.vlgmr.msra.gmra.mxu2 %v561_v44  ;;  %724 = vmatpush.msrb.mxu0 %v100_v6 }
  0x41   :  { %743 = vmatpush.msrb.mxu1 %v117_v7  ;;  %764 = vmatpush.msrb.mxu2 %v132_v8 }
  0x42   :  { %783 = vmatpush.msrb.mxu3 %v149_v9  ;;  %645 = vmatmul.f32.vlgmr.msra.gmra.mxu0 %v1745_v45 }
  0x43   :  { %705 = vmatmul.f32.vlgmr.msra.gmra.mxu3 %v1747_v46  ;;  %789 = vmatpush.msra.mxu0 %v179_v10 }
  0x44   :  { %829 = vmatpush.msra.mxu2 %v211_v11  ;;  %744 = vmatpush.msrb.mxu1 %v116_v12 }
  0x45   :  { %784 = vmatpush.msrb.mxu3 %v148_v13  ;;  %665 = vmatmul.f32.vlgmr.msra.gmra.mxu1 %v1749_v47 }
  0x46   :  { %790 = vmatpush.msra.mxu0 %v178_v14  ;;  %809 = vmatpush.msra.mxu1 %v195_v15 }
  0x47   :  { %830 = vmatpush.msra.mxu2 %v210_v16  ;;  %849 = vmatpush.msra.mxu3 %v227_v17 }
  0x48   :  { %791 = vmatpush.msra.mxu0 %v177_v18  ;;  %810 = vmatpush.msra.mxu1 %v194_v19 }
  0x49   :  { %831 = vmatpush.msra.mxu2 %v209_v20  ;;  %850 = vmatpush.msra.mxu3 %v226_v21 }
  0x4a   :  { %765 = vmatmul.f32.vlgmr.msrb.gmra.mxu2 %v1787_v60  ;;  %792 = vmatpush.msra.mxu0 %v176_v22 }
  0x4b   :  { %811 = vmatpush.msra.mxu1 %v193_v23  ;;  %832 = vmatpush.msra.mxu2 %v208_v24 }
  0x4c   :  { %851 = vmatpush.msra.mxu3 %v225_v28  ;;  %725 = vmatmul.f32.vlgmr.msrb.gmra.mxu0 %v1789_v61 }
  0x4d   :  { %785 = vmatmul.f32.vlgmr.msrb.gmra.mxu3 %v1791_v62  ;;  %793 = vmatpush.msra.mxu0 %v175_v31 }
  0x4e   :  { %10 = vsyncpa [#allocation4], 0  ;;  %812 = vmatpush.msra.mxu1 %v192_v32  ;;  %833 = vmatpush.msra.mxu2 %v207_v33  ;;  %v206_v37 = vld [vmem:[%s3041_s1 + $0x550] sm:$0xff]  ;;  %v223_v38 = vld [vmem:[%s3041_s1 + $0x5d8] sm:$0xff]  ;;  %vm25_vm0 = vcmask 25600   ;;  %vm1288_vm1 = vcmask 1043456  }
  0x4f   :  { %852 = vmatpush.msra.mxu3 %v224_v34  ;;  %745 = vmatmul.f32.vlgmr.msrb.gmra.mxu1 %v1793_v63  ;;  %v173_v39 = vld [vmem:[%s3041_s1 + $0x448] sm:$0xff]  ;;  %v190_v40 = vld [vmem:[%s3041_s1 + $0x4d0] sm:$0xff]  ;;  %v172_v43 = vld [vmem:[%s3041_s1 + $0x440] sm:$0xff]  ;;  %vm1284_vm2 = vcmask 31744   ;;  %vm1334_vm6 = vcmask 517120  }
  0x50   :  { %794 = vmatpush.msra.mxu0 %v174_v35  ;;  %813 = vmatpush.msra.mxu1 %v191_v36  ;;  %v205_v41 = vld [vmem:[%s3041_s1 + $0x548] sm:$0xff]  ;;  %v222_v42 = vld [vmem:[%s3041_s1 + $0x5d0] sm:$0xff]  ;;  %v204_v45 = vld [vmem:[%s3041_s1 + $0x540] sm:$0xff] }
  0x51   :  { %834 = vmatpush.msra.mxu2 %v206_v37  ;;  %853 = vmatpush.msra.mxu3 %v223_v38  ;;  %v189_v44 = vld [vmem:[%s3041_s1 + $0x4c8] sm:$0xff]  ;;  %v171_v47 = vld [vmem:[%s3041_s1 + $0x438] sm:$0xff]  ;;  %v188_v48 = vld [vmem:[%s3041_s1 + $0x4c0] sm:$0xff] }
  0x52   :  { %795 = vmatpush.msra.mxu0 %v173_v39  ;;  %814 = vmatpush.msra.mxu1 %v190_v40  ;;  %v221_v46 = vld [vmem:[%s3041_s1 + $0x5c8] sm:$0xff]  ;;  %v203_v49 = vld [vmem:[%s3041_s1 + $0x538] sm:$0xff]  ;;  %v220_v50 = vld [vmem:[%s3041_s1 + $0x5c0] sm:$0xff] }
  0x53   :  { %835 = vmatpush.msra.mxu2 %v205_v41  ;;  %854 = vmatpush.msra.mxu3 %v222_v42  ;;  %v170_v51 = vld [vmem:[%s3041_s1 + $0x430] sm:$0xff]  ;;  %v187_v52 = vld [vmem:[%s3041_s1 + $0x4b8] sm:$0xff]  ;;  %v169_v55 = vld [vmem:[%s3041_s1 + $0x428] sm:$0xff] }
  0x54   :  { %796 = vmatpush.msra.mxu0 %v172_v43  ;;  %815 = vmatpush.msra.mxu1 %v189_v44  ;;  %v202_v53 = vld [vmem:[%s3041_s1 + $0x530] sm:$0xff]  ;;  %v219_v54 = vld [vmem:[%s3041_s1 + $0x5b8] sm:$0xff]  ;;  %v201_v57 = vld [vmem:[%s3041_s1 + $0x528] sm:$0xff] }
  0x55   :  { %836 = vmatpush.msra.mxu2 %v204_v45  ;;  %855 = vmatpush.msra.mxu3 %v221_v46  ;;  %v186_v56 = vld [vmem:[%s3041_s1 + $0x4b0] sm:$0xff]  ;;  %v168_v59 = vld [vmem:[%s3041_s1 + $0x420] sm:$0xff]  ;;  %v185_v60 = vld [vmem:[%s3041_s1 + $0x4a8] sm:$0xff] }
  0x56   :  { %797 = vmatpush.msra.mxu0 %v171_v47  ;;  %816 = vmatpush.msra.mxu1 %v188_v48  ;;  %v218_v58 = vld [vmem:[%s3041_s1 + $0x5b0] sm:$0xff]  ;;  %v200_v61 = vld [vmem:[%s3041_s1 + $0x520] sm:$0xff]  ;;  %v217_v62 = vld [vmem:[%s3041_s1 + $0x5a8] sm:$0xff] }
  0x57   :  { %837 = vmatpush.msra.mxu2 %v203_v49  ;;  %856 = vmatpush.msra.mxu3 %v220_v50  ;;  %v167_v63 = vld [vmem:[%s3041_s1 + $0x418] sm:$0xff]  ;;  %v184_v0 = vld [vmem:[%s3041_s1 + $0x4a0] sm:$0xff]  ;;  %v166_v3 = vld [vmem:[%s3041_s1 + $0x410] sm:$0xff] }
  0x58   :  { %798 = vmatpush.msra.mxu0 %v170_v51  ;;  %817 = vmatpush.msra.mxu1 %v187_v52  ;;  %v199_v1 = vld [vmem:[%s3041_s1 + $0x518] sm:$0xff]  ;;  %v216_v2 = vld [vmem:[%s3041_s1 + $0x5a0] sm:$0xff]  ;;  %v198_v5 = vld [vmem:[%s3041_s1 + $0x510] sm:$0xff] }
  0x59   :  { %838 = vmatpush.msra.mxu2 %v202_v53  ;;  %857 = vmatpush.msra.mxu3 %v219_v54  ;;  %v183_v4 = vld [vmem:[%s3041_s1 + $0x498] sm:$0xff]  ;;  %v165_v7 = vld [vmem:[%s3041_s1 + $0x408] sm:$0xff]  ;;  %v182_v8 = vld [vmem:[%s3041_s1 + $0x490] sm:$0xff] }
  0x5a   :  { %799 = vmatpush.msra.mxu0 %v169_v55  ;;  %818 = vmatpush.msra.mxu1 %v186_v56  ;;  %v215_v6 = vld [vmem:[%s3041_s1 + $0x598] sm:$0xff]  ;;  %v197_v9 = vld [vmem:[%s3041_s1 + $0x508] sm:$0xff]  ;;  %v214_v10 = vld [vmem:[%s3041_s1 + $0x590] sm:$0xff] }
  0x5b   :  { %839 = vmatpush.msra.mxu2 %v201_v57  ;;  %858 = vmatpush.msra.mxu3 %v218_v58  ;;  %v164_v11 = vld [vmem:[%s3041_s1 + $0x400] sm:$0xff]  ;;  %v181_v12 = vld [vmem:[%s3041_s1 + $0x488] sm:$0xff]  ;;  %v243_v15 = vld [vmem:[%s3041_s1 + $0x678] sm:$0xff] }
  0x5c   :  { %800 = vmatpush.msra.mxu0 %v168_v59  ;;  %819 = vmatpush.msra.mxu1 %v185_v60  ;;  %v196_v13 = vld [vmem:[%s3041_s1 + $0x500] sm:$0xff]  ;;  %v213_v14 = vld [vmem:[%s3041_s1 + $0x588] sm:$0xff]  ;;  %v275_v16 = vld [vmem:[%s3041_s1 + $0x778] sm:$0xff] }
  0x5d   :  { %840 = vmatpush.msra.mxu2 %v200_v61  ;;  %859 = vmatpush.msra.mxu3 %v217_v62  ;;  %v180_v17 = vld [vmem:[%s3041_s1 + $0x480] sm:$0xff]  ;;  %v242_v19 = vld [vmem:[%s3041_s1 + $0x670] sm:$0xff]  ;;  %v259_v20 = vld [vmem:[%s3041_s1 + $0x6f8] sm:$0xff] }
  0x5e   :  { %801 = vmatpush.msra.mxu0 %v167_v63  ;;  %820 = vmatpush.msra.mxu1 %v184_v0  ;;  %v212_v18 = vld [vmem:[%s3041_s1 + $0x580] sm:$0xff]  ;;  %v274_v21 = vld [vmem:[%s3041_s1 + $0x770] sm:$0xff]  ;;  %v291_v22 = vld [vmem:[%s3041_s1 + $0x7f8] sm:$0xff] }
  0x5f   :  { %841 = vmatpush.msra.mxu2 %v199_v1  ;;  %860 = vmatpush.msra.mxu3 %v216_v2  ;;  %v241_v23 = vld [vmem:[%s3041_s1 + $0x668] sm:$0xff]  ;;  %v258_v24 = vld [vmem:[%s3041_s1 + $0x6f0] sm:$0xff]  ;;  %v240_v28 = vld [vmem:[%s3041_s1 + $0x660] sm:$0xff] }
  0x60   :  { %802 = vmatpush.msra.mxu0 %v166_v3  ;;  %821 = vmatpush.msra.mxu1 %v183_v4  ;;  %v2078_v29 = vld.sshfl [vmem:[#allocation1 + $0x20] sm:$0xff pattern:$0x73625140]  ;;  %v2080_v31 = vld.sshfl [vmem:[#allocation1 + $0x30] sm:$0xff pattern:$0x73625140] }
  0x61   :  { %842 = vmatpush.msra.mxu2 %v198_v5  ;;  %861 = vmatpush.msra.mxu3 %v215_v6  ;;  %v2082_v32 = vld.sshfl [vmem:[#allocation1 + $0x28] sm:$0xff pattern:$0x73625140]  ;;  %v2090_v33 = vld.sshfl [vmem:[#allocation1 + $0x38] sm:$0xff pattern:$0x73625140] }
  0x62   :  { %803 = vmatpush.msra.mxu0 %v165_v7  ;;  %822 = vmatpush.msra.mxu1 %v182_v8  ;;  %v272_v34 = vld [vmem:[%s3041_s1 + $0x760] sm:$0xff]  ;;  %v289_v35 = vld [vmem:[%s3041_s1 + $0x7e8] sm:$0xff]  ;;  %v239_v36 = vld [vmem:[%s3041_s1 + $0x658] sm:$0xff] }
  0x63   :  { %843 = vmatpush.msra.mxu2 %v197_v9  ;;  %862 = vmatpush.msra.mxu3 %v214_v10  ;;  %v256_v37 = vld [vmem:[%s3041_s1 + $0x6e0] sm:$0xff]  ;;  %v271_v38 = vld [vmem:[%s3041_s1 + $0x758] sm:$0xff]  ;;  %v238_v40 = vld [vmem:[%s3041_s1 + $0x650] sm:$0xff] }
  0x64   :  { %804 = vmatpush.msra.mxu0 %v164_v11  ;;  %823 = vmatpush.msra.mxu1 %v181_v12  ;;  %v288_v39 = vld [vmem:[%s3041_s1 + $0x7e0] sm:$0xff]  ;;  %v255_v41 = vld [vmem:[%s3041_s1 + $0x6d8] sm:$0xff]  ;;  %v270_v42 = vld [vmem:[%s3041_s1 + $0x750] sm:$0xff] }
  0x65   :  { %844 = vmatpush.msra.mxu2 %v196_v13  ;;  %863 = vmatpush.msra.mxu3 %v213_v14  ;;  %v287_v43 = vld [vmem:[%s3041_s1 + $0x7d8] sm:$0xff]  ;;  %v237_v44 = vld [vmem:[%s3041_s1 + $0x648] sm:$0xff]  ;;  %v254_v45 = vld [vmem:[%s3041_s1 + $0x6d0] sm:$0xff] }
  0x66   :  { %805 = vmatmul.f32.vlgmr.msra.gmra.mxu0 %v1873_v25  ;;  %845 = vmatmul.f32.vlgmr.msra.gmra.mxu2 %v1875_v26  ;;  %v273_v25 = vld [vmem:[%s3041_s1 + $0x768] sm:$0xff]  ;;  %v290_v26 = vld [vmem:[%s3041_s1 + $0x7f0] sm:$0xff]  ;;  %v236_v48 = vld [vmem:[%s3041_s1 + $0x640] sm:$0xff] }
  0x67   :  { %869 = vmatpush.msrb.mxu0 %v243_v15  ;;  %909 = vmatpush.msrb.mxu2 %v275_v16  ;;  %v269_v46 = vld [vmem:[%s3041_s1 + $0x748] sm:$0xff]  ;;  %v286_v47 = vld [vmem:[%s3041_s1 + $0x7d0] sm:$0xff]  ;;  %v268_v50 = vld [vmem:[%s3041_s1 + $0x740] sm:$0xff] }
  0x68   :  { %824 = vmatpush.msra.mxu1 %v180_v17  ;;  %864 = vmatpush.msra.mxu3 %v212_v18  ;;  %v253_v49 = vld [vmem:[%s3041_s1 + $0x6c8] sm:$0xff]  ;;  %v235_v52 = vld [vmem:[%s3041_s1 + $0x638] sm:$0xff]  ;;  %v252_v53 = vld [vmem:[%s3041_s1 + $0x6c0] sm:$0xff] }
  0x69   :  { %825 = vmatmul.f32.vlgmr.msra.gmra.mxu1 %v1877_v27  ;;  %865 = vmatmul.f32.vlgmr.msra.gmra.mxu3 %v1885_v30  ;;  %v257_v27 = vld [vmem:[%s3041_s1 + $0x6e8] sm:$0xff]  ;;  %v267_v54 = vld [vmem:[%s3041_s1 + $0x738] sm:$0xff]  ;;  %v284_v55 = vld [vmem:[%s3041_s1 + $0x7c0] sm:$0xff] }
  0x6a   :  { %870 = vmatpush.msrb.mxu0 %v242_v19  ;;  %889 = vmatpush.msrb.mxu1 %v259_v20  ;;  %v33_v30 = vld [vmem:[%s3040_s0 + $0x28] sm:$0xff]  ;;  %v234_v56 = vld [vmem:[%s3041_s1 + $0x630] sm:$0xff]  ;;  %v251_v57 = vld [vmem:[%s3041_s1 + $0x6b8] sm:$0xff] }
  0x6b   :  { %910 = vmatpush.msrb.mxu2 %v274_v21  ;;  %929 = vmatpush.msrb.mxu3 %v291_v22  ;;  %578 = vst [vmem:[#allocation1 + $0x20] ss:$4 sm:$0xff] %v33_v30  ;;  %v285_v51 = vld [vmem:[%s3041_s1 + $0x7c8] sm:$0xff]  ;;  %v266_v58 = vld [vmem:[%s3041_s1 + $0x730] sm:$0xff]  ;;  %v283_v59 = vld [vmem:[%s3041_s1 + $0x7b8] sm:$0xff] }
  0x6c   :  { %871 = vmatpush.msrb.mxu0 %v241_v23  ;;  %890 = vmatpush.msrb.mxu1 %v258_v24  ;;  %v233_v60 = vld [vmem:[%s3041_s1 + $0x628] sm:$0xff]  ;;  %v250_v61 = vld [vmem:[%s3041_s1 + $0x6b0] sm:$0xff]  ;;  %v232_v0 = vld [vmem:[%s3041_s1 + $0x620] sm:$0xff] }
  0x6d   :  { %911 = vmatpush.msrb.mxu2 %v273_v25  ;;  %930 = vmatpush.msrb.mxu3 %v290_v26  ;;  %v265_v62 = vld [vmem:[%s3041_s1 + $0x728] sm:$0xff]  ;;  %v282_v63 = vld [vmem:[%s3041_s1 + $0x7b0] sm:$0xff]  ;;  %v264_v2 = vld [vmem:[%s3041_s1 + $0x720] sm:$0xff] }
  0x6e   :  { %872 = vmatpush.msrb.mxu0 %v240_v28  ;;  %891 = vmatpush.msrb.mxu1 %v257_v27  ;;  %v249_v1 = vld [vmem:[%s3041_s1 + $0x6a8] sm:$0xff]  ;;  %v231_v4 = vld [vmem:[%s3041_s1 + $0x618] sm:$0xff]  ;;  %v248_v5 = vld [vmem:[%s3041_s1 + $0x6a0] sm:$0xff] }
  0x6f   :  { %912 = vmatpush.msrb.mxu2 %v272_v34  ;;  %931 = vmatpush.msrb.mxu3 %v289_v35  ;;  %v281_v3 = vld [vmem:[%s3041_s1 + $0x7a8] sm:$0xff]  ;;  %v263_v6 = vld [vmem:[%s3041_s1 + $0x718] sm:$0xff]  ;;  %v280_v7 = vld [vmem:[%s3041_s1 + $0x7a0] sm:$0xff] }
  0x70   :  { %873 = vmatpush.msrb.mxu0 %v239_v36  ;;  %892 = vmatpush.msrb.mxu1 %v256_v37  ;;  %v230_v8 = vld [vmem:[%s3041_s1 + $0x610] sm:$0xff]  ;;  %v247_v9 = vld [vmem:[%s3041_s1 + $0x698] sm:$0xff]  ;;  %v229_v12 = vld [vmem:[%s3041_s1 + $0x608] sm:$0xff] }
  0x71   :  { %913 = vmatpush.msrb.mxu2 %v271_v38  ;;  %932 = vmatpush.msrb.mxu3 %v288_v39  ;;  %v262_v10 = vld [vmem:[%s3041_s1 + $0x710] sm:$0xff]  ;;  %v279_v11 = vld [vmem:[%s3041_s1 + $0x798] sm:$0xff]  ;;  %v261_v14 = vld [vmem:[%s3041_s1 + $0x708] sm:$0xff] }
  0x72   :  { %874 = vmatpush.msrb.mxu0 %v238_v40  ;;  %893 = vmatpush.msrb.mxu1 %v255_v41  ;;  %v246_v13 = vld [vmem:[%s3041_s1 + $0x690] sm:$0xff]  ;;  %v228_v16 = vld [vmem:[%s3041_s1 + $0x600] sm:$0xff]  ;;  %v245_v17 = vld [vmem:[%s3041_s1 + $0x688] sm:$0xff] }
  0x73   :  { %914 = vmatpush.msrb.mxu2 %v270_v42  ;;  %933 = vmatpush.msrb.mxu3 %v287_v43  ;;  %v278_v15 = vld [vmem:[%s3041_s1 + $0x790] sm:$0xff]  ;;  %v260_v18 = vld [vmem:[%s3041_s1 + $0x700] sm:$0xff]  ;;  %v277_v19 = vld [vmem:[%s3041_s1 + $0x788] sm:$0xff] }
  0x74   :  { %875 = vmatpush.msrb.mxu0 %v237_v44  ;;  %894 = vmatpush.msrb.mxu1 %v254_v45  ;;  %v307_v20 = vld [vmem:[%s3041_s1 + $0x878] sm:$0xff]  ;;  %v244_v22 = vld [vmem:[%s3041_s1 + $0x680] sm:$0xff]  ;;  %v306_v24 = vld [vmem:[%s3041_s1 + $0x870] sm:$0xff] }
  0x75   :  { %915 = vmatpush.msrb.mxu2 %v269_v46  ;;  %934 = vmatpush.msrb.mxu3 %v286_v47  ;;  %v339_v21 = vld [vmem:[%s3041_s1 + $0x978] sm:$0xff]  ;;  %v276_v23 = vld [vmem:[%s3041_s1 + $0x780] sm:$0xff]  ;;  %v338_v26 = vld [vmem:[%s3041_s1 + $0x970] sm:$0xff] }
  0x76   :  { %876 = vmatpush.msrb.mxu0 %v236_v48  ;;  %895 = vmatpush.msrb.mxu1 %v253_v49  ;;  %v323_v25 = vld [vmem:[%s3041_s1 + $0x8f8] sm:$0xff]  ;;  %v337_v27 = vld [vmem:[%s3041_s1 + $0x968] sm:$0xff]  ;;  %v304_v30 = vld [vmem:[%s3041_s1 + $0x860] sm:$0xff] }
  0x77   :  { %916 = vmatpush.msrb.mxu2 %v268_v50  ;;  %935 = vmatpush.msrb.mxu3 %v285_v51  ;;  %v355_v28 = vld [vmem:[%s3041_s1 + $0x9f8] sm:$0xff]  ;;  %v336_v34 = vld [vmem:[%s3041_s1 + $0x960] sm:$0xff]  ;;  %v353_v35 = vld [vmem:[%s3041_s1 + $0x9e8] sm:$0xff] }
  0x78   :  { %877 = vmatpush.msrb.mxu0 %v235_v52  ;;  %896 = vmatpush.msrb.mxu1 %v252_v53  ;;  %v303_v36 = vld [vmem:[%s3041_s1 + $0x858] sm:$0xff]  ;;  %v320_v37 = vld [vmem:[%s3041_s1 + $0x8e0] sm:$0xff]  ;;  %v302_v40 = vld [vmem:[%s3041_s1 + $0x850] sm:$0xff] }
  0x79   :  { %917 = vmatpush.msrb.mxu2 %v267_v54  ;;  %936 = vmatpush.msrb.mxu3 %v284_v55  ;;  %v335_v38 = vld [vmem:[%s3041_s1 + $0x958] sm:$0xff]  ;;  %v352_v39 = vld [vmem:[%s3041_s1 + $0x9e0] sm:$0xff]  ;;  %v334_v42 = vld [vmem:[%s3041_s1 + $0x950] sm:$0xff] }
  0x7a   :  { %878 = vmatpush.msrb.mxu0 %v234_v56  ;;  %897 = vmatpush.msrb.mxu1 %v251_v57  ;;  %v319_v41 = vld [vmem:[%s3041_s1 + $0x8d8] sm:$0xff]  ;;  %v301_v44 = vld [vmem:[%s3041_s1 + $0x848] sm:$0xff]  ;;  %v318_v45 = vld [vmem:[%s3041_s1 + $0x8d0] sm:$0xff] }
  0x7b   :  { %918 = vmatpush.msrb.mxu2 %v266_v58  ;;  %937 = vmatpush.msrb.mxu3 %v283_v59  ;;  %v351_v43 = vld [vmem:[%s3041_s1 + $0x9d8] sm:$0xff]  ;;  %v333_v46 = vld [vmem:[%s3041_s1 + $0x948] sm:$0xff]  ;;  %v350_v47 = vld [vmem:[%s3041_s1 + $0x9d0] sm:$0xff] }
  0x7c   :  { %879 = vmatpush.msrb.mxu0 %v233_v60  ;;  %898 = vmatpush.msrb.mxu1 %v250_v61  ;;  %v300_v48 = vld [vmem:[%s3041_s1 + $0x840] sm:$0xff]  ;;  %v317_v49 = vld [vmem:[%s3041_s1 + $0x8c8] sm:$0xff]  ;;  %v299_v52 = vld [vmem:[%s3041_s1 + $0x838] sm:$0xff] }
  0x7d   :  { %919 = vmatpush.msrb.mxu2 %v265_v62  ;;  %938 = vmatpush.msrb.mxu3 %v282_v63  ;;  %v332_v50 = vld [vmem:[%s3041_s1 + $0x940] sm:$0xff]  ;;  %v349_v51 = vld [vmem:[%s3041_s1 + $0x9c8] sm:$0xff]  ;;  %v331_v54 = vld [vmem:[%s3041_s1 + $0x938] sm:$0xff] }
  0x7e   :  { %880 = vmatpush.msrb.mxu0 %v232_v0  ;;  %899 = vmatpush.msrb.mxu1 %v249_v1  ;;  %v316_v53 = vld [vmem:[%s3041_s1 + $0x8c0] sm:$0xff]  ;;  %v298_v56 = vld [vmem:[%s3041_s1 + $0x830] sm:$0xff]  ;;  %v315_v57 = vld [vmem:[%s3041_s1 + $0x8b8] sm:$0xff] }
  0x7f   :  { %920 = vmatpush.msrb.mxu2 %v264_v2  ;;  %939 = vmatpush.msrb.mxu3 %v281_v3  ;;  %v348_v55 = vld [vmem:[%s3041_s1 + $0x9c0] sm:$0xff]  ;;  %v330_v58 = vld [vmem:[%s3041_s1 + $0x930] sm:$0xff]  ;;  %v347_v59 = vld [vmem:[%s3041_s1 + $0x9b8] sm:$0xff] }
  0x80   :  { %881 = vmatpush.msrb.mxu0 %v231_v4  ;;  %900 = vmatpush.msrb.mxu1 %v248_v5  ;;  %v297_v60 = vld [vmem:[%s3041_s1 + $0x828] sm:$0xff]  ;;  %v314_v61 = vld [vmem:[%s3041_s1 + $0x8b0] sm:$0xff]  ;;  %v296_v0 = vld [vmem:[%s3041_s1 + $0x820] sm:$0xff] }
  0x81   :  { %921 = vmatpush.msrb.mxu2 %v263_v6  ;;  %940 = vmatpush.msrb.mxu3 %v280_v7  ;;  %v329_v62 = vld [vmem:[%s3041_s1 + $0x928] sm:$0xff]  ;;  %v346_v63 = vld [vmem:[%s3041_s1 + $0x9b0] sm:$0xff]  ;;  %v328_v2 = vld [vmem:[%s3041_s1 + $0x920] sm:$0xff] }
  0x82   :  { %882 = vmatpush.msrb.mxu0 %v230_v8  ;;  %901 = vmatpush.msrb.mxu1 %v247_v9  ;;  %v313_v1 = vld [vmem:[%s3041_s1 + $0x8a8] sm:$0xff]  ;;  %v295_v4 = vld [vmem:[%s3041_s1 + $0x818] sm:$0xff]  ;;  %v312_v5 = vld [vmem:[%s3041_s1 + $0x8a0] sm:$0xff] }
  0x83   :  { %922 = vmatpush.msrb.mxu2 %v262_v10  ;;  %941 = vmatpush.msrb.mxu3 %v279_v11  ;;  %v345_v3 = vld [vmem:[%s3041_s1 + $0x9a8] sm:$0xff]  ;;  %v327_v6 = vld [vmem:[%s3041_s1 + $0x918] sm:$0xff]  ;;  %v344_v7 = vld [vmem:[%s3041_s1 + $0x9a0] sm:$0xff] }
  0x84   :  { %883 = vmatpush.msrb.mxu0 %v229_v12  ;;  %902 = vmatpush.msrb.mxu1 %v246_v13  ;;  %v294_v8 = vld [vmem:[%s3041_s1 + $0x810] sm:$0xff]  ;;  %v311_v9 = vld [vmem:[%s3041_s1 + $0x898] sm:$0xff]  ;;  %v293_v12 = vld [vmem:[%s3041_s1 + $0x808] sm:$0xff] }
  0x85   :  { %923 = vmatpush.msrb.mxu2 %v261_v14  ;;  %942 = vmatpush.msrb.mxu3 %v278_v15  ;;  %v326_v10 = vld [vmem:[%s3041_s1 + $0x910] sm:$0xff]  ;;  %v343_v11 = vld [vmem:[%s3041_s1 + $0x998] sm:$0xff]  ;;  %v325_v14 = vld [vmem:[%s3041_s1 + $0x908] sm:$0xff] }
  0x86   :  { %884 = vmatpush.msrb.mxu0 %v228_v16  ;;  %903 = vmatpush.msrb.mxu1 %v245_v17  ;;  %v310_v13 = vld [vmem:[%s3041_s1 + $0x890] sm:$0xff]  ;;  %v292_v16 = vld [vmem:[%s3041_s1 + $0x800] sm:$0xff]  ;;  %v309_v17 = vld [vmem:[%s3041_s1 + $0x888] sm:$0xff] }
  0x87   :  { %924 = vmatpush.msrb.mxu2 %v260_v18  ;;  %943 = vmatpush.msrb.mxu3 %v277_v19  ;;  %v342_v15 = vld [vmem:[%s3041_s1 + $0x990] sm:$0xff]  ;;  %v324_v18 = vld [vmem:[%s3041_s1 + $0x900] sm:$0xff]  ;;  %v341_v19 = vld [vmem:[%s3041_s1 + $0x988] sm:$0xff] }
  0x88   :  { %885 = vmatmul.f32.vlgmr.msrb.gmra.mxu0 %v2078_v29  ;;  %925 = vmatmul.f32.vlgmr.msrb.gmra.mxu2 %v2080_v31  ;;  %v305_v29 = vld [vmem:[%s3041_s1 + $0x868] sm:$0xff]  ;;  %v322_v31 = vld [vmem:[%s3041_s1 + $0x8f0] sm:$0xff] }
  0x89   :  { %949 = vmatpush.msra.mxu0 %v307_v20  ;;  %989 = vmatpush.msra.mxu2 %v339_v21  ;;  %v579_v20 = vld.sshfl [vmem:[#allocation1] sm:$0xff pattern:$0x73625140]  ;;  %v581_v21 = vld.sshfl [vmem:[#allocation1 + $0x10] sm:$0xff pattern:$0x73625140] }
  0x8a   :  { %904 = vmatpush.msrb.mxu1 %v244_v22  ;;  %944 = vmatpush.msrb.mxu3 %v276_v23  ;;  %v371_v22 = vld [vmem:[%s3041_s1 + $0xa78] sm:$0xff] }
  0x8b   :  { %905 = vmatmul.f32.vlgmr.msrb.gmra.mxu1 %v2082_v32  ;;  %945 = vmatmul.f32.vlgmr.msrb.gmra.mxu3 %v2090_v33  ;;  %v354_v32 = vld [vmem:[%s3041_s1 + $0x9f0] sm:$0xff]  ;;  %v321_v33 = vld [vmem:[%s3041_s1 + $0x8e8] sm:$0xff]  ;;  %v403_v23 = vld [vmem:[%s3041_s1 + $0xb78] sm:$0xff] }
  0x8c   :  { %950 = vmatpush.msra.mxu0 %v306_v24  ;;  %969 = vmatpush.msra.mxu1 %v323_v25  ;;  %v308_v24 = vld [vmem:[%s3041_s1 + $0x880] sm:$0xff] }
  0x8d   :  { %990 = vmatpush.msra.mxu2 %v338_v26  ;;  %1009 = vmatpush.msra.mxu3 %v355_v28  ;;  %v340_v25 = vld [vmem:[%s3041_s1 + $0x980] sm:$0xff]  ;;  %v580_v26 = vld.sshfl [vmem:[#allocation1 + $0x8] sm:$0xff pattern:$0x73625140] }
  0x8e   :  { %951 = vmatpush.msra.mxu0 %v305_v29  ;;  %970 = vmatpush.msra.mxu1 %v322_v31  ;;  %v582_v28 = vld.sshfl [vmem:[#allocation1 + $0x18] sm:$0xff pattern:$0x73625140]  ;;  %v370_v29 = vld [vmem:[%s3041_s1 + $0xa70] sm:$0xff] }
  0x8f   :  { %991 = vmatpush.msra.mxu2 %v337_v27  ;;  %1010 = vmatpush.msra.mxu3 %v354_v32  ;;  %v387_v31 = vld [vmem:[%s3041_s1 + $0xaf8] sm:$0xff]  ;;  %v402_v27 = vld [vmem:[%s3041_s1 + $0xb70] sm:$0xff] }
  0x90   :  { %952 = vmatpush.msra.mxu0 %v304_v30  ;;  %971 = vmatpush.msra.mxu1 %v321_v33  ;;  %v419_v32 = vld [vmem:[%s3041_s1 + $0xbf8] sm:$0xff]  ;;  %v369_v30 = vld [vmem:[%s3041_s1 + $0xa68] sm:$0xff]  ;;  %v386_v33 = vld [vmem:[%s3041_s1 + $0xaf0] sm:$0xff] }
  0x91   :  { %992 = vmatpush.msra.mxu2 %v336_v34  ;;  %1011 = vmatpush.msra.mxu3 %v353_v35  ;;  %v401_v34 = vld [vmem:[%s3041_s1 + $0xb68] sm:$0xff]  ;;  %v418_v35 = vld [vmem:[%s3041_s1 + $0xbf0] sm:$0xff] }
  0x92   :  { %953 = vmatpush.msra.mxu0 %v303_v36  ;;  %972 = vmatpush.msra.mxu1 %v320_v37  ;;  %v368_v36 = vld [vmem:[%s3041_s1 + $0xa60] sm:$0xff]  ;;  %v385_v37 = vld [vmem:[%s3041_s1 + $0xae8] sm:$0xff] }
  0x93   :  { %993 = vmatpush.msra.mxu2 %v335_v38  ;;  %1012 = vmatpush.msra.mxu3 %v352_v39  ;;  %v400_v38 = vld [vmem:[%s3041_s1 + $0xb60] sm:$0xff]  ;;  %v417_v39 = vld [vmem:[%s3041_s1 + $0xbe8] sm:$0xff] }
  0x94   :  { %954 = vmatpush.msra.mxu0 %v302_v40  ;;  %973 = vmatpush.msra.mxu1 %v319_v41  ;;  %v367_v40 = vld [vmem:[%s3041_s1 + $0xa58] sm:$0xff]  ;;  %v384_v41 = vld [vmem:[%s3041_s1 + $0xae0] sm:$0xff] }
  0x95   :  { %994 = vmatpush.msra.mxu2 %v334_v42  ;;  %1013 = vmatpush.msra.mxu3 %v351_v43  ;;  %v399_v42 = vld [vmem:[%s3041_s1 + $0xb58] sm:$0xff]  ;;  %v416_v43 = vld [vmem:[%s3041_s1 + $0xbe0] sm:$0xff] }
  0x96   :  { %955 = vmatpush.msra.mxu0 %v301_v44  ;;  %974 = vmatpush.msra.mxu1 %v318_v45  ;;  %v366_v44 = vld [vmem:[%s3041_s1 + $0xa50] sm:$0xff]  ;;  %v383_v45 = vld [vmem:[%s3041_s1 + $0xad8] sm:$0xff] }
  0x97   :  { %995 = vmatpush.msra.mxu2 %v333_v46  ;;  %1014 = vmatpush.msra.mxu3 %v350_v47  ;;  %v398_v46 = vld [vmem:[%s3041_s1 + $0xb50] sm:$0xff]  ;;  %v415_v47 = vld [vmem:[%s3041_s1 + $0xbd8] sm:$0xff] }
  0x98   :  { %956 = vmatpush.msra.mxu0 %v300_v48  ;;  %975 = vmatpush.msra.mxu1 %v317_v49  ;;  %v365_v48 = vld [vmem:[%s3041_s1 + $0xa48] sm:$0xff]  ;;  %v382_v49 = vld [vmem:[%s3041_s1 + $0xad0] sm:$0xff] }
  0x99   :  { %996 = vmatpush.msra.mxu2 %v332_v50  ;;  %1015 = vmatpush.msra.mxu3 %v349_v51  ;;  %v397_v50 = vld [vmem:[%s3041_s1 + $0xb48] sm:$0xff]  ;;  %v414_v51 = vld [vmem:[%s3041_s1 + $0xbd0] sm:$0xff] }
  0x9a   :  { %957 = vmatpush.msra.mxu0 %v299_v52  ;;  %976 = vmatpush.msra.mxu1 %v316_v53  ;;  %v364_v52 = vld [vmem:[%s3041_s1 + $0xa40] sm:$0xff]  ;;  %v381_v53 = vld [vmem:[%s3041_s1 + $0xac8] sm:$0xff] }
  0x9b   :  { %997 = vmatpush.msra.mxu2 %v331_v54  ;;  %1016 = vmatpush.msra.mxu3 %v348_v55  ;;  %v396_v54 = vld [vmem:[%s3041_s1 + $0xb40] sm:$0xff]  ;;  %v413_v55 = vld [vmem:[%s3041_s1 + $0xbc8] sm:$0xff] }
  0x9c   :  { %958 = vmatpush.msra.mxu0 %v298_v56  ;;  %977 = vmatpush.msra.mxu1 %v315_v57  ;;  %v363_v56 = vld [vmem:[%s3041_s1 + $0xa38] sm:$0xff]  ;;  %v380_v57 = vld [vmem:[%s3041_s1 + $0xac0] sm:$0xff] }
  0x9d   :  { %998 = vmatpush.msra.mxu2 %v330_v58  ;;  %1017 = vmatpush.msra.mxu3 %v347_v59  ;;  %v395_v58 = vld [vmem:[%s3041_s1 + $0xb38] sm:$0xff]  ;;  %v412_v59 = vld [vmem:[%s3041_s1 + $0xbc0] sm:$0xff] }
  0x9e   :  { %959 = vmatpush.msra.mxu0 %v297_v60  ;;  %978 = vmatpush.msra.mxu1 %v314_v61  ;;  %v362_v60 = vld [vmem:[%s3041_s1 + $0xa30] sm:$0xff]  ;;  %v379_v61 = vld [vmem:[%s3041_s1 + $0xab8] sm:$0xff] }
  0x9f   :  { %999 = vmatpush.msra.mxu2 %v329_v62  ;;  %1018 = vmatpush.msra.mxu3 %v346_v63  ;;  %v394_v62 = vld [vmem:[%s3041_s1 + $0xb30] sm:$0xff]  ;;  %v411_v63 = vld [vmem:[%s3041_s1 + $0xbb8] sm:$0xff] }
  0xa0   :  { %960 = vmatpush.msra.mxu0 %v296_v0  ;;  %979 = vmatpush.msra.mxu1 %v313_v1  ;;  %v361_v0 = vld [vmem:[%s3041_s1 + $0xa28] sm:$0xff]  ;;  %v378_v1 = vld [vmem:[%s3041_s1 + $0xab0] sm:$0xff] }
  0xa1   :  { %1000 = vmatpush.msra.mxu2 %v328_v2  ;;  %1019 = vmatpush.msra.mxu3 %v345_v3  ;;  %v393_v2 = vld [vmem:[%s3041_s1 + $0xb28] sm:$0xff]  ;;  %v410_v3 = vld [vmem:[%s3041_s1 + $0xbb0] sm:$0xff] }
  0xa2   :  { %961 = vmatpush.msra.mxu0 %v295_v4  ;;  %980 = vmatpush.msra.mxu1 %v312_v5  ;;  %v360_v4 = vld [vmem:[%s3041_s1 + $0xa20] sm:$0xff]  ;;  %v377_v5 = vld [vmem:[%s3041_s1 + $0xaa8] sm:$0xff] }
  0xa3   :  { %1001 = vmatpush.msra.mxu2 %v327_v6  ;;  %1020 = vmatpush.msra.mxu3 %v344_v7  ;;  %v392_v6 = vld [vmem:[%s3041_s1 + $0xb20] sm:$0xff]  ;;  %v409_v7 = vld [vmem:[%s3041_s1 + $0xba8] sm:$0xff] }
  0xa4   :  { %962 = vmatpush.msra.mxu0 %v294_v8  ;;  %981 = vmatpush.msra.mxu1 %v311_v9  ;;  %v359_v8 = vld [vmem:[%s3041_s1 + $0xa18] sm:$0xff]  ;;  %v376_v9 = vld [vmem:[%s3041_s1 + $0xaa0] sm:$0xff] }
  0xa5   :  { %1002 = vmatpush.msra.mxu2 %v326_v10  ;;  %1021 = vmatpush.msra.mxu3 %v343_v11  ;;  %v391_v10 = vld [vmem:[%s3041_s1 + $0xb18] sm:$0xff]  ;;  %v408_v11 = vld [vmem:[%s3041_s1 + $0xba0] sm:$0xff] }
  0xa6   :  { %963 = vmatpush.msra.mxu0 %v293_v12  ;;  %982 = vmatpush.msra.mxu1 %v310_v13  ;;  %v358_v12 = vld [vmem:[%s3041_s1 + $0xa10] sm:$0xff]  ;;  %v375_v13 = vld [vmem:[%s3041_s1 + $0xa98] sm:$0xff] }
  0xa7   :  { %1003 = vmatpush.msra.mxu2 %v325_v14  ;;  %1022 = vmatpush.msra.mxu3 %v342_v15  ;;  %v390_v14 = vld [vmem:[%s3041_s1 + $0xb10] sm:$0xff]  ;;  %v407_v15 = vld [vmem:[%s3041_s1 + $0xb98] sm:$0xff] }
  0xa8   :  { %964 = vmatpush.msra.mxu0 %v292_v16  ;;  %983 = vmatpush.msra.mxu1 %v309_v17  ;;  %v357_v16 = vld [vmem:[%s3041_s1 + $0xa08] sm:$0xff]  ;;  %v374_v17 = vld [vmem:[%s3041_s1 + $0xa90] sm:$0xff] }
  0xa9   :  { %1004 = vmatpush.msra.mxu2 %v324_v18  ;;  %1023 = vmatpush.msra.mxu3 %v341_v19  ;;  %v34_v18 = vld [vmem:[%s3040_s0 + $0x30] sm:$0xff]  ;;  %v389_v19 = vld [vmem:[%s3041_s1 + $0xb08] sm:$0xff] }
  0xaa   :  { %965 = vmatmul.f32.vlgmr.msra.gmra.mxu0 %v579_v20  ;;  %1005 = vmatmul.f32.vlgmr.msra.gmra.mxu2 %v581_v21  ;;  %v406_v20 = vld [vmem:[%s3041_s1 + $0xb90] sm:$0xff]  ;;  %587 = vst [vmem:[#allocation1] ss:$4 sm:$0xff] %v34_v18  ;;  %v356_v21 = vld [vmem:[%s3041_s1 + $0xa00] sm:$0xff]  ;;  %v439_v18 = vld [vmem:[%s3041_s1 + $0xc98] sm:$0xff] }
  0xab   :  { %1029 = vmatpush.msrb.mxu0 %v371_v22  ;;  %1069 = vmatpush.msrb.mxu2 %v403_v23  ;;  %v373_v22 = vld [vmem:[%s3041_s1 + $0xa88] sm:$0xff]  ;;  %v388_v23 = vld [vmem:[%s3041_s1 + $0xb00] sm:$0xff] }
  0xac   :  { %984 = vmatpush.msra.mxu1 %v308_v24  ;;  %1024 = vmatpush.msra.mxu3 %v340_v25  ;;  %v405_v24 = vld [vmem:[%s3041_s1 + $0xb88] sm:$0xff]  ;;  %v583_v25 = vld.sshfl [vmem:[#allocation1 + $0x20] sm:$0xff pattern:$0x73625140] }
  0xad   :  { %985 = vmatmul.f32.vlgmr.msra.gmra.mxu1 %v580_v26  ;;  %1025 = vmatmul.f32.vlgmr.msra.gmra.mxu3 %v582_v28  ;;  %v585_v26 = vld.sshfl [vmem:[#allocation1 + $0x30] sm:$0xff pattern:$0x73625140]  ;;  %v435_v28 = vld [vmem:[%s3041_s1 + $0xc78] sm:$0xff] }
  0xae   :  { %1030 = vmatpush.msrb.mxu0 %v370_v29  ;;  %1049 = vmatpush.msrb.mxu1 %v387_v31  ;;  %v467_v29 = vld [vmem:[%s3041_s1 + $0xd78] sm:$0xff]  ;;  %v372_v31 = vld [vmem:[%s3041_s1 + $0xa80] sm:$0xff] }
  0xaf   :  { %1070 = vmatpush.msrb.mxu2 %v402_v27  ;;  %1089 = vmatpush.msrb.mxu3 %v419_v32  ;;  %v404_v27 = vld [vmem:[%s3041_s1 + $0xb80] sm:$0xff]  ;;  %v584_v32 = vld.sshfl [vmem:[#allocation1 + $0x28] sm:$0xff pattern:$0x73625140] }
  0xb0   :  { %1031 = vmatpush.msrb.mxu0 %v369_v30  ;;  %1050 = vmatpush.msrb.mxu1 %v386_v33  ;;  %v586_v30 = vld.sshfl [vmem:[#allocation1 + $0x38] sm:$0xff pattern:$0x73625140]  ;;  %v434_v33 = vld [vmem:[%s3041_s1 + $0xc70] sm:$0xff] }
  0xb1   :  { %1071 = vmatpush.msrb.mxu2 %v401_v34  ;;  %1090 = vmatpush.msrb.mxu3 %v418_v35  ;;  %v451_v34 = vld [vmem:[%s3041_s1 + $0xcf8] sm:$0xff]  ;;  %v466_v35 = vld [vmem:[%s3041_s1 + $0xd70] sm:$0xff] }
  0xb2   :  { %1032 = vmatpush.msrb.mxu0 %v368_v36  ;;  %1051 = vmatpush.msrb.mxu1 %v385_v37  ;;  %v483_v36 = vld [vmem:[%s3041_s1 + $0xdf8] sm:$0xff]  ;;  %v433_v37 = vld [vmem:[%s3041_s1 + $0xc68] sm:$0xff] }
  0xb3   :  { %1072 = vmatpush.msrb.mxu2 %v400_v38  ;;  %1091 = vmatpush.msrb.mxu3 %v417_v39  ;;  %v450_v38 = vld [vmem:[%s3041_s1 + $0xcf0] sm:$0xff]  ;;  %v465_v39 = vld [vmem:[%s3041_s1 + $0xd68] sm:$0xff] }
  0xb4   :  { %1033 = vmatpush.msrb.mxu0 %v367_v40  ;;  %1052 = vmatpush.msrb.mxu1 %v384_v41  ;;  %v482_v40 = vld [vmem:[%s3041_s1 + $0xdf0] sm:$0xff]  ;;  %v432_v41 = vld [vmem:[%s3041_s1 + $0xc60] sm:$0xff] }
  0xb5   :  { %1073 = vmatpush.msrb.mxu2 %v399_v42  ;;  %1092 = vmatpush.msrb.mxu3 %v416_v43  ;;  %v449_v42 = vld [vmem:[%s3041_s1 + $0xce8] sm:$0xff]  ;;  %v464_v43 = vld [vmem:[%s3041_s1 + $0xd60] sm:$0xff] }
  0xb6   :  { %1034 = vmatpush.msrb.mxu0 %v366_v44  ;;  %1053 = vmatpush.msrb.mxu1 %v383_v45  ;;  %v481_v44 = vld [vmem:[%s3041_s1 + $0xde8] sm:$0xff]  ;;  %v431_v45 = vld [vmem:[%s3041_s1 + $0xc58] sm:$0xff] }
  0xb7   :  { %1074 = vmatpush.msrb.mxu2 %v398_v46  ;;  %1093 = vmatpush.msrb.mxu3 %v415_v47  ;;  %v448_v46 = vld [vmem:[%s3041_s1 + $0xce0] sm:$0xff]  ;;  %v463_v47 = vld [vmem:[%s3041_s1 + $0xd58] sm:$0xff] }
  0xb8   :  { %1035 = vmatpush.msrb.mxu0 %v365_v48  ;;  %1054 = vmatpush.msrb.mxu1 %v382_v49  ;;  %v480_v48 = vld [vmem:[%s3041_s1 + $0xde0] sm:$0xff]  ;;  %v430_v49 = vld [vmem:[%s3041_s1 + $0xc50] sm:$0xff] }
  0xb9   :  { %1075 = vmatpush.msrb.mxu2 %v397_v50  ;;  %1094 = vmatpush.msrb.mxu3 %v414_v51  ;;  %v447_v50 = vld [vmem:[%s3041_s1 + $0xcd8] sm:$0xff]  ;;  %v462_v51 = vld [vmem:[%s3041_s1 + $0xd50] sm:$0xff] }
  0xba   :  { %1036 = vmatpush.msrb.mxu0 %v364_v52  ;;  %1055 = vmatpush.msrb.mxu1 %v381_v53  ;;  %v479_v52 = vld [vmem:[%s3041_s1 + $0xdd8] sm:$0xff]  ;;  %v429_v53 = vld [vmem:[%s3041_s1 + $0xc48] sm:$0xff] }
  0xbb   :  { %1076 = vmatpush.msrb.mxu2 %v396_v54  ;;  %1095 = vmatpush.msrb.mxu3 %v413_v55  ;;  %v446_v54 = vld [vmem:[%s3041_s1 + $0xcd0] sm:$0xff]  ;;  %v461_v55 = vld [vmem:[%s3041_s1 + $0xd48] sm:$0xff] }
  0xbc   :  { %1037 = vmatpush.msrb.mxu0 %v363_v56  ;;  %1056 = vmatpush.msrb.mxu1 %v380_v57  ;;  %v478_v56 = vld [vmem:[%s3041_s1 + $0xdd0] sm:$0xff]  ;;  %v428_v57 = vld [vmem:[%s3041_s1 + $0xc40] sm:$0xff] }
  0xbd   :  { %1077 = vmatpush.msrb.mxu2 %v395_v58  ;;  %1096 = vmatpush.msrb.mxu3 %v412_v59  ;;  %v445_v58 = vld [vmem:[%s3041_s1 + $0xcc8] sm:$0xff]  ;;  %v460_v59 = vld [vmem:[%s3041_s1 + $0xd40] sm:$0xff] }
  0xbe   :  { %1038 = vmatpush.msrb.mxu0 %v362_v60  ;;  %1057 = vmatpush.msrb.mxu1 %v379_v61  ;;  %v477_v60 = vld [vmem:[%s3041_s1 + $0xdc8] sm:$0xff]  ;;  %v427_v61 = vld [vmem:[%s3041_s1 + $0xc38] sm:$0xff] }
  0xbf   :  { %1078 = vmatpush.msrb.mxu2 %v394_v62  ;;  %1097 = vmatpush.msrb.mxu3 %v411_v63  ;;  %v444_v62 = vld [vmem:[%s3041_s1 + $0xcc0] sm:$0xff]  ;;  %v459_v63 = vld [vmem:[%s3041_s1 + $0xd38] sm:$0xff] }
  0xc0   :  { %1039 = vmatpush.msrb.mxu0 %v361_v0  ;;  %1058 = vmatpush.msrb.mxu1 %v378_v1  ;;  %v476_v0 = vld [vmem:[%s3041_s1 + $0xdc0] sm:$0xff]  ;;  %v426_v1 = vld [vmem:[%s3041_s1 + $0xc30] sm:$0xff] }
  0xc1   :  { %1079 = vmatpush.msrb.mxu2 %v393_v2  ;;  %1098 = vmatpush.msrb.mxu3 %v410_v3  ;;  %v443_v2 = vld [vmem:[%s3041_s1 + $0xcb8] sm:$0xff]  ;;  %v458_v3 = vld [vmem:[%s3041_s1 + $0xd30] sm:$0xff] }
  0xc2   :  { %1040 = vmatpush.msrb.mxu0 %v360_v4  ;;  %1059 = vmatpush.msrb.mxu1 %v377_v5  ;;  %v475_v4 = vld [vmem:[%s3041_s1 + $0xdb8] sm:$0xff]  ;;  %v425_v5 = vld [vmem:[%s3041_s1 + $0xc28] sm:$0xff] }
  0xc3   :  { %1080 = vmatpush.msrb.mxu2 %v392_v6  ;;  %1099 = vmatpush.msrb.mxu3 %v409_v7  ;;  %v442_v6 = vld [vmem:[%s3041_s1 + $0xcb0] sm:$0xff]  ;;  %v457_v7 = vld [vmem:[%s3041_s1 + $0xd28] sm:$0xff] }
  0xc4   :  { %1041 = vmatpush.msrb.mxu0 %v359_v8  ;;  %1060 = vmatpush.msrb.mxu1 %v376_v9  ;;  %v474_v8 = vld [vmem:[%s3041_s1 + $0xdb0] sm:$0xff]  ;;  %v424_v9 = vld [vmem:[%s3041_s1 + $0xc20] sm:$0xff] }
  0xc5   :  { %1081 = vmatpush.msrb.mxu2 %v391_v10  ;;  %1100 = vmatpush.msrb.mxu3 %v408_v11  ;;  %v441_v10 = vld [vmem:[%s3041_s1 + $0xca8] sm:$0xff]  ;;  %v456_v11 = vld [vmem:[%s3041_s1 + $0xd20] sm:$0xff] }
  0xc6   :  { %1042 = vmatpush.msrb.mxu0 %v358_v12  ;;  %1061 = vmatpush.msrb.mxu1 %v375_v13  ;;  %v473_v12 = vld [vmem:[%s3041_s1 + $0xda8] sm:$0xff]  ;;  %v423_v13 = vld [vmem:[%s3041_s1 + $0xc18] sm:$0xff] }
  0xc7   :  { %1082 = vmatpush.msrb.mxu2 %v390_v14  ;;  %1101 = vmatpush.msrb.mxu3 %v407_v15  ;;  %v440_v14 = vld [vmem:[%s3041_s1 + $0xca0] sm:$0xff]  ;;  %v455_v15 = vld [vmem:[%s3041_s1 + $0xd18] sm:$0xff] }
  0xc8   :  { %1043 = vmatpush.msrb.mxu0 %v357_v16  ;;  %1062 = vmatpush.msrb.mxu1 %v374_v17  ;;  %v472_v16 = vld [vmem:[%s3041_s1 + $0xda0] sm:$0xff]  ;;  %v422_v17 = vld [vmem:[%s3041_s1 + $0xc10] sm:$0xff] }
  0xc9   :  { %1083 = vmatpush.msrb.mxu2 %v389_v19  ;;  %1102 = vmatpush.msrb.mxu3 %v406_v20  ;;  %v454_v19 = vld [vmem:[%s3041_s1 + $0xd10] sm:$0xff]  ;;  %v471_v20 = vld [vmem:[%s3041_s1 + $0xd98] sm:$0xff] }
  0xca   :  { %1044 = vmatpush.msrb.mxu0 %v356_v21  ;;  %1063 = vmatpush.msrb.mxu1 %v373_v22  ;;  %v421_v21 = vld [vmem:[%s3041_s1 + $0xc08] sm:$0xff]  ;;  %v438_v22 = vld [vmem:[%s3041_s1 + $0xc90] sm:$0xff] }
  0xcb   :  { %1084 = vmatpush.msrb.mxu2 %v388_v23  ;;  %1103 = vmatpush.msrb.mxu3 %v405_v24  ;;  %v35_v23 = vld [vmem:[%s3040_s0 + $0x38] sm:$0xff]  ;;  %v453_v24 = vld [vmem:[%s3041_s1 + $0xd08] sm:$0xff] }
  0xcc   :  { %1045 = vmatmul.f32.vlgmr.msrb.gmra.mxu0 %v583_v25  ;;  %1085 = vmatmul.f32.vlgmr.msrb.gmra.mxu2 %v585_v26  ;;  %v470_v25 = vld [vmem:[%s3041_s1 + $0xd90] sm:$0xff]  ;;  %588 = vst [vmem:[#allocation1 + $0x20] ss:$4 sm:$0xff] %v35_v23  ;;  %v420_v26 = vld [vmem:[%s3041_s1 + $0xc00] sm:$0xff]  ;;  %v503_v23 = vld [vmem:[%s3041_s1 + $0xe98] sm:$0xff] }
  0xcd   :  { %1109 = vmatpush.msra.mxu0 %v435_v28  ;;  %1149 = vmatpush.msra.mxu2 %v467_v29  ;;  %v437_v28 = vld [vmem:[%s3041_s1 + $0xc88] sm:$0xff]  ;;  %v452_v29 = vld [vmem:[%s3041_s1 + $0xd00] sm:$0xff] }
  0xce   :  { %1064 = vmatpush.msrb.mxu1 %v372_v31  ;;  %1104 = vmatpush.msrb.mxu3 %v404_v27  ;;  %v469_v31 = vld [vmem:[%s3041_s1 + $0xd88] sm:$0xff]  ;;  %v589_v27 = vld.sshfl [vmem:[#allocation1] sm:$0xff pattern:$0x73625140] }
  0xcf   :  { %1065 = vmatmul.f32.vlgmr.msrb.gmra.mxu1 %v584_v32  ;;  %1105 = vmatmul.f32.vlgmr.msrb.gmra.mxu3 %v586_v30  ;;  %v591_v32 = vld.sshfl [vmem:[#allocation1 + $0x10] sm:$0xff pattern:$0x73625140]  ;;  %v499_v30 = vld [vmem:[%s3041_s1 + $0xe78] sm:$0xff] }
  0xd0   :  { %1110 = vmatpush.msra.mxu0 %v434_v33  ;;  %1129 = vmatpush.msra.mxu1 %v451_v34  ;;  %v531_v33 = vld [vmem:[%s3041_s1 + $0xf78] sm:$0xff]  ;;  %v436_v34 = vld [vmem:[%s3041_s1 + $0xc80] sm:$0xff] }
  0xd1   :  { %1150 = vmatpush.msra.mxu2 %v466_v35  ;;  %1169 = vmatpush.msra.mxu3 %v483_v36  ;;  %v468_v35 = vld [vmem:[%s3041_s1 + $0xd80] sm:$0xff]  ;;  %v590_v36 = vld.sshfl [vmem:[#allocation1 + $0x8] sm:$0xff pattern:$0x73625140] }
  0xd2   :  { %1111 = vmatpush.msra.mxu0 %v433_v37  ;;  %1130 = vmatpush.msra.mxu1 %v450_v38  ;;  %v592_v37 = vld.sshfl [vmem:[#allocation1 + $0x18] sm:$0xff pattern:$0x73625140]  ;;  %v498_v38 = vld [vmem:[%s3041_s1 + $0xe70] sm:$0xff] }
  0xd3   :  { %1151 = vmatpush.msra.mxu2 %v465_v39  ;;  %1170 = vmatpush.msra.mxu3 %v482_v40  ;;  %v515_v39 = vld [vmem:[%s3041_s1 + $0xef8] sm:$0xff]  ;;  %v530_v40 = vld [vmem:[%s3041_s1 + $0xf70] sm:$0xff] }
  0xd4   :  { %1112 = vmatpush.msra.mxu0 %v432_v41  ;;  %1131 = vmatpush.msra.mxu1 %v449_v42  ;;  %v547_v41 = vld [vmem:[%s3041_s1 + $0xff8] sm:$0xff]  ;;  %v497_v42 = vld [vmem:[%s3041_s1 + $0xe68] sm:$0xff] }
  0xd5   :  { %1152 = vmatpush.msra.mxu2 %v464_v43  ;;  %1171 = vmatpush.msra.mxu3 %v481_v44  ;;  %v514_v43 = vld [vmem:[%s3041_s1 + $0xef0] sm:$0xff]  ;;  %v529_v44 = vld [vmem:[%s3041_s1 + $0xf68] sm:$0xff] }
  0xd6   :  { %1113 = vmatpush.msra.mxu0 %v431_v45  ;;  %1132 = vmatpush.msra.mxu1 %v448_v46  ;;  %v546_v45 = vld [vmem:[%s3041_s1 + $0xff0] sm:$0xff]  ;;  %v496_v46 = vld [vmem:[%s3041_s1 + $0xe60] sm:$0xff] }
  0xd7   :  { %1153 = vmatpush.msra.mxu2 %v463_v47  ;;  %1172 = vmatpush.msra.mxu3 %v480_v48  ;;  %v513_v47 = vld [vmem:[%s3041_s1 + $0xee8] sm:$0xff]  ;;  %v528_v48 = vld [vmem:[%s3041_s1 + $0xf60] sm:$0xff] }
  0xd8   :  { %1114 = vmatpush.msra.mxu0 %v430_v49  ;;  %1133 = vmatpush.msra.mxu1 %v447_v50  ;;  %v545_v49 = vld [vmem:[%s3041_s1 + $0xfe8] sm:$0xff]  ;;  %v495_v50 = vld [vmem:[%s3041_s1 + $0xe58] sm:$0xff] }
  0xd9   :  { %1154 = vmatpush.msra.mxu2 %v462_v51  ;;  %1173 = vmatpush.msra.mxu3 %v479_v52  ;;  %v512_v51 = vld [vmem:[%s3041_s1 + $0xee0] sm:$0xff]  ;;  %v527_v52 = vld [vmem:[%s3041_s1 + $0xf58] sm:$0xff] }
  0xda   :  { %1115 = vmatpush.msra.mxu0 %v429_v53  ;;  %1134 = vmatpush.msra.mxu1 %v446_v54  ;;  %v544_v53 = vld [vmem:[%s3041_s1 + $0xfe0] sm:$0xff]  ;;  %v494_v54 = vld [vmem:[%s3041_s1 + $0xe50] sm:$0xff] }
  0xdb   :  { %1155 = vmatpush.msra.mxu2 %v461_v55  ;;  %1174 = vmatpush.msra.mxu3 %v478_v56  ;;  %v511_v55 = vld [vmem:[%s3041_s1 + $0xed8] sm:$0xff]  ;;  %v526_v56 = vld [vmem:[%s3041_s1 + $0xf50] sm:$0xff] }
  0xdc   :  { %1116 = vmatpush.msra.mxu0 %v428_v57  ;;  %1135 = vmatpush.msra.mxu1 %v445_v58  ;;  %v543_v57 = vld [vmem:[%s3041_s1 + $0xfd8] sm:$0xff]  ;;  %v493_v58 = vld [vmem:[%s3041_s1 + $0xe48] sm:$0xff] }
  0xdd   :  { %1156 = vmatpush.msra.mxu2 %v460_v59  ;;  %1175 = vmatpush.msra.mxu3 %v477_v60  ;;  %v510_v59 = vld [vmem:[%s3041_s1 + $0xed0] sm:$0xff]  ;;  %v525_v60 = vld [vmem:[%s3041_s1 + $0xf48] sm:$0xff] }
  0xde   :  { %1117 = vmatpush.msra.mxu0 %v427_v61  ;;  %1136 = vmatpush.msra.mxu1 %v444_v62  ;;  %v542_v61 = vld [vmem:[%s3041_s1 + $0xfd0] sm:$0xff]  ;;  %v492_v62 = vld [vmem:[%s3041_s1 + $0xe40] sm:$0xff] }
  0xdf   :  { %1157 = vmatpush.msra.mxu2 %v459_v63  ;;  %1176 = vmatpush.msra.mxu3 %v476_v0  ;;  %v509_v63 = vld [vmem:[%s3041_s1 + $0xec8] sm:$0xff]  ;;  %v524_v0 = vld [vmem:[%s3041_s1 + $0xf40] sm:$0xff] }
  0xe0   :  { %1118 = vmatpush.msra.mxu0 %v426_v1  ;;  %1137 = vmatpush.msra.mxu1 %v443_v2  ;;  %v541_v1 = vld [vmem:[%s3041_s1 + $0xfc8] sm:$0xff]  ;;  %v491_v2 = vld [vmem:[%s3041_s1 + $0xe38] sm:$0xff] }
  0xe1   :  { %1158 = vmatpush.msra.mxu2 %v458_v3  ;;  %1177 = vmatpush.msra.mxu3 %v475_v4  ;;  %v508_v3 = vld [vmem:[%s3041_s1 + $0xec0] sm:$0xff]  ;;  %v523_v4 = vld [vmem:[%s3041_s1 + $0xf38] sm:$0xff] }
  0xe2   :  { %1119 = vmatpush.msra.mxu0 %v425_v5  ;;  %1138 = vmatpush.msra.mxu1 %v442_v6  ;;  %v540_v5 = vld [vmem:[%s3041_s1 + $0xfc0] sm:$0xff]  ;;  %v490_v6 = vld [vmem:[%s3041_s1 + $0xe30] sm:$0xff] }
  0xe3   :  { %1159 = vmatpush.msra.mxu2 %v457_v7  ;;  %1178 = vmatpush.msra.mxu3 %v474_v8  ;;  %v507_v7 = vld [vmem:[%s3041_s1 + $0xeb8] sm:$0xff]  ;;  %v522_v8 = vld [vmem:[%s3041_s1 + $0xf30] sm:$0xff] }
  0xe4   :  { %1120 = vmatpush.msra.mxu0 %v424_v9  ;;  %1139 = vmatpush.msra.mxu1 %v441_v10  ;;  %v539_v9 = vld [vmem:[%s3041_s1 + $0xfb8] sm:$0xff]  ;;  %v489_v10 = vld [vmem:[%s3041_s1 + $0xe28] sm:$0xff] }
  0xe5   :  { %1160 = vmatpush.msra.mxu2 %v456_v11  ;;  %1179 = vmatpush.msra.mxu3 %v473_v12  ;;  %v506_v11 = vld [vmem:[%s3041_s1 + $0xeb0] sm:$0xff]  ;;  %v521_v12 = vld [vmem:[%s3041_s1 + $0xf28] sm:$0xff] }
  0xe6   :  { %1121 = vmatpush.msra.mxu0 %v423_v13  ;;  %1140 = vmatpush.msra.mxu1 %v440_v14  ;;  %v538_v13 = vld [vmem:[%s3041_s1 + $0xfb0] sm:$0xff]  ;;  %v488_v14 = vld [vmem:[%s3041_s1 + $0xe20] sm:$0xff] }
  0xe7   :  { %1161 = vmatpush.msra.mxu2 %v455_v15  ;;  %1180 = vmatpush.msra.mxu3 %v472_v16  ;;  %v505_v15 = vld [vmem:[%s3041_s1 + $0xea8] sm:$0xff]  ;;  %v520_v16 = vld [vmem:[%s3041_s1 + $0xf20] sm:$0xff] }
  0xe8   :  { %1122 = vmatpush.msra.mxu0 %v422_v17  ;;  %1141 = vmatpush.msra.mxu1 %v439_v18  ;;  %v537_v17 = vld [vmem:[%s3041_s1 + $0xfa8] sm:$0xff]  ;;  %v487_v18 = vld [vmem:[%s3041_s1 + $0xe18] sm:$0xff] }
  0xe9   :  { %1162 = vmatpush.msra.mxu2 %v454_v19  ;;  %1181 = vmatpush.msra.mxu3 %v471_v20  ;;  %v504_v19 = vld [vmem:[%s3041_s1 + $0xea0] sm:$0xff]  ;;  %v519_v20 = vld [vmem:[%s3041_s1 + $0xf18] sm:$0xff] }
  0xea   :  { %1123 = vmatpush.msra.mxu0 %v421_v21  ;;  %1142 = vmatpush.msra.mxu1 %v438_v22  ;;  %v536_v21 = vld [vmem:[%s3041_s1 + $0xfa0] sm:$0xff]  ;;  %v486_v22 = vld [vmem:[%s3041_s1 + $0xe10] sm:$0xff] }
  0xeb   :  { %1163 = vmatpush.msra.mxu2 %v453_v24  ;;  %1182 = vmatpush.msra.mxu3 %v470_v25  ;;  %v518_v24 = vld [vmem:[%s3041_s1 + $0xf10] sm:$0xff]  ;;  %v535_v25 = vld [vmem:[%s3041_s1 + $0xf98] sm:$0xff] }
  0xec   :  { %1124 = vmatpush.msra.mxu0 %v420_v26  ;;  %1143 = vmatpush.msra.mxu1 %v437_v28  ;;  %v485_v26 = vld [vmem:[%s3041_s1 + $0xe08] sm:$0xff]  ;;  %v502_v28 = vld [vmem:[%s3041_s1 + $0xe90] sm:$0xff] }
  0xed   :  { %1164 = vmatpush.msra.mxu2 %v452_v29  ;;  %1183 = vmatpush.msra.mxu3 %v469_v31  ;;  %v517_v29 = vld [vmem:[%s3041_s1 + $0xf08] sm:$0xff]  ;;  %v534_v31 = vld [vmem:[%s3041_s1 + $0xf90] sm:$0xff] }
  0xee   :  { %1125 = vmatmul.f32.vlgmr.msra.gmra.mxu0 %v589_v27  ;;  %1165 = vmatmul.f32.vlgmr.msra.gmra.mxu2 %v591_v32  ;;  %v484_v27 = vld [vmem:[%s3041_s1 + $0xe00] sm:$0xff]  ;;  %v501_v32 = vld [vmem:[%s3041_s1 + $0xe88] sm:$0xff] }
  0xef   :  { %1189 = vmatpush.msrb.mxu0 %v499_v30  ;;  %1229 = vmatpush.msrb.mxu2 %v531_v33  ;;  %v516_v30 = vld [vmem:[%s3041_s1 + $0xf00] sm:$0xff]  ;;  %v533_v33 = vld [vmem:[%s3041_s1 + $0xf88] sm:$0xff] }
  0xf0   :  { %1144 = vmatpush.msra.mxu1 %v436_v34  ;;  %1184 = vmatpush.msra.mxu3 %v468_v35  ;;  %v593_v34 = vld.sshfl [vmem:[#allocation1 + $0x20] sm:$0xff pattern:$0x73625140]  ;;  %v595_v35 = vld.sshfl [vmem:[#allocation1 + $0x30] sm:$0xff pattern:$0x73625140] }
  0xf1   :  { %1145 = vmatmul.f32.vlgmr.msra.gmra.mxu1 %v590_v36  ;;  %1185 = vmatmul.f32.vlgmr.msra.gmra.mxu3 %v592_v37  ;;  %v500_v36 = vld [vmem:[%s3041_s1 + $0xe80] sm:$0xff] }
  0xf2   :  { %1190 = vmatpush.msrb.mxu0 %v498_v38  ;;  %1209 = vmatpush.msrb.mxu1 %v515_v39  ;;  %v532_v37 = vld [vmem:[%s3041_s1 + $0xf80] sm:$0xff]  ;;  %v594_v38 = vld.sshfl [vmem:[#allocation1 + $0x28] sm:$0xff pattern:$0x73625140] }
  0xf3   :  { %1230 = vmatpush.msrb.mxu2 %v530_v40  ;;  %1249 = vmatpush.msrb.mxu3 %v547_v41  ;;  %v596_v39 = vld.sshfl [vmem:[#allocation1 + $0x38] sm:$0xff pattern:$0x73625140]  ;;  %v666_v40 = vpop.f32.mrf.mxu1  ;;  %v646_v41 = vpop.f32.mrf.mxu0 }
  0xf4   :  { %1191 = vmatpush.msrb.mxu0 %v497_v42  ;;  %1210 = vmatpush.msrb.mxu1 %v514_v43  ;;  %v667_v42 = vadd.f32 %v666_v40, %v646_v41  ;;  %v686_v43 = vpop.f32.mrf.mxu2 }
  0xf5   :  { %1231 = vmatpush.msrb.mxu2 %v529_v44  ;;  %1250 = vmatpush.msrb.mxu3 %v546_v45  ;;  %v706_v45 = vpop.f32.mrf.mxu3 }
  0xf6   :  { %1192 = vmatpush.msrb.mxu0 %v496_v46  ;;  %1211 = vmatpush.msrb.mxu1 %v513_v47  ;;  %v687_v44 = vadd.f32 %v686_v43, %v667_v42  ;;  %v1357_v43 = vld [vmem:[%s3042_s2] ss:$0 sm:$0xff]  ;;  %s1390_s2 = smov [#allocation3]  }
  0xf7   :  { %1232 = vmatpush.msrb.mxu2 %v528_v48  ;;  %1251 = vmatpush.msrb.mxu3 %v545_v49  ;;  %s1341_s6 = sshll.u32 %s1390_s2, 4  ;;  %s1342_s6 = int_to_ptr.vmem [resolvable:$true] %s1341_s6 }
  0xf8   :  { %1193 = vmatpush.msrb.mxu0 %v495_v50  ;;  %1212 = vmatpush.msrb.mxu1 %v512_v51  ;;  %v707_v46 = vadd.f32 %v706_v45, %v687_v44 }
  0xf9   :  { %1233 = vmatpush.msrb.mxu2 %v527_v52  ;;  %1252 = vmatpush.msrb.mxu3 %v544_v53 }
  0xfa   :  { %1194 = vmatpush.msrb.mxu0 %v494_v54  ;;  %1213 = vmatpush.msrb.mxu1 %v511_v55 }
  0xfb   :  { %1234 = vmatpush.msrb.mxu2 %v526_v56  ;;  %1253 = vmatpush.msrb.mxu3 %v543_v57  ;;  %v726_v47 = vpop.f32.mrf.mxu0  ;;  %v746_v49 = vpop.f32.mrf.mxu1 }
  0xfc   :  { %1195 = vmatpush.msrb.mxu0 %v493_v58  ;;  %1214 = vmatpush.msrb.mxu1 %v510_v59  ;;  %v727_v48 = vadd.f32 %v726_v47, %v707_v46  ;;  %v766_v51 = vpop.f32.mrf.mxu2  ;;  %v1358_v47 = vld [vmem:[%s3044_s4] ss:$0 sm:$0xff]  ;;  %s1343_s4 = sshll.u32 %s3045_s5, 4  ;;  %s1344_s4 = int_to_ptr.hbm [resolvable:$true] %s1343_s4 }
  0xfd   :  { %1235 = vmatpush.msrb.mxu2 %v525_v60  ;;  %1254 = vmatpush.msrb.mxu3 %v542_v61  ;;  %v786_v53 = vpop.f32.mrf.mxu3 }
  0xfe   :  { %1196 = vmatpush.msrb.mxu0 %v492_v62  ;;  %1215 = vmatpush.msrb.mxu1 %v509_v63  ;;  %v747_v50 = vadd.f32 %v746_v49, %v727_v48 }
  0xff   :  { %1236 = vmatpush.msrb.mxu2 %v524_v0  ;;  %1255 = vmatpush.msrb.mxu3 %v541_v1 }
 0x100   :  { %1197 = vmatpush.msrb.mxu0 %v491_v2  ;;  %1216 = vmatpush.msrb.mxu1 %v508_v3  ;;  %v767_v52 = vadd.f32 %v766_v51, %v747_v50 }
 0x101   :  { %1237 = vmatpush.msrb.mxu2 %v523_v4  ;;  %1256 = vmatpush.msrb.mxu3 %v540_v5 }
 0x102   :  { %1198 = vmatpush.msrb.mxu0 %v490_v6  ;;  %1217 = vmatpush.msrb.mxu1 %v507_v7  ;;  %v787_v55 = vadd.f32 %v786_v53, %v767_v52 }
 0x103   :  { %1238 = vmatpush.msrb.mxu2 %v522_v8  ;;  %1257 = vmatpush.msrb.mxu3 %v539_v9  ;;  %v806_v54 = vpop.f32.mrf.mxu0  ;;  %v826_v57 = vpop.f32.mrf.mxu1 }
 0x104   :  { %1199 = vmatpush.msrb.mxu0 %v489_v10  ;;  %1218 = vmatpush.msrb.mxu1 %v506_v11  ;;  %v807_v56 = vadd.f32 %v806_v54, %v787_v55  ;;  %v846_v58 = vpop.f32.mrf.mxu2 }
 0x105   :  { %1239 = vmatpush.msrb.mxu2 %v521_v12  ;;  %1258 = vmatpush.msrb.mxu3 %v538_v13  ;;  %v866_v61 = vpop.f32.mrf.mxu3  ;;  %v1389_v13 = vmov 0.0  }
 0x106   :  { %1200 = vmatpush.msrb.mxu0 %v488_v14  ;;  %1219 = vmatpush.msrb.mxu1 %v505_v15  ;;  %v827_v59 = vadd.f32 %v826_v57, %v807_v56  ;;  %26 = vst.msk [vmem:[#allocation2] sm:$0x3] %vm25_vm0, %v1389_v13 }
 0x107   :  { %1240 = vmatpush.msrb.mxu2 %v520_v16  ;;  %1259 = vmatpush.msrb.mxu3 %v537_v17 }
 0x108   :  { %1201 = vmatpush.msrb.mxu0 %v487_v18  ;;  %1220 = vmatpush.msrb.mxu1 %v504_v19  ;;  %v847_v60 = vadd.f32 %v846_v58, %v827_v59 }
 0x109   :  { %1241 = vmatpush.msrb.mxu2 %v519_v20  ;;  %1260 = vmatpush.msrb.mxu3 %v536_v21  ;;  %v1279_v21 = vld [vmem:[%s3043_s3] sm:$0xf] }
 0x10a   :  { %1202 = vmatpush.msrb.mxu0 %v486_v22  ;;  %1221 = vmatpush.msrb.mxu1 %v503_v23  ;;  %v867_v63 = vadd.f32 %v866_v61, %v847_v60 }
 0x10b   :  { %1242 = vmatpush.msrb.mxu2 %v518_v24  ;;  %1261 = vmatpush.msrb.mxu3 %v535_v25  ;;  %v886_v62 = vpop.f32.mrf.mxu0  ;;  %v906_v1 = vpop.f32.mrf.mxu1 }
 0x10c   :  { %1203 = vmatpush.msrb.mxu0 %v485_v26  ;;  %1222 = vmatpush.msrb.mxu1 %v502_v28  ;;  %v887_v0 = vadd.f32 %v886_v62, %v867_v63  ;;  %v926_v2 = vpop.f32.mrf.mxu2 }
 0x10d   :  { %1243 = vmatpush.msrb.mxu2 %v517_v29  ;;  %1262 = vmatpush.msrb.mxu3 %v534_v31 }
 0x10e   :  { %1204 = vmatpush.msrb.mxu0 %v484_v27  ;;  %1223 = vmatpush.msrb.mxu1 %v501_v32  ;;  %v907_v3 = vadd.f32 %v906_v1, %v887_v0  ;;  %v946_v5 = vpop.f32.mrf.mxu3 }
 0x10f   :  { %1244 = vmatpush.msrb.mxu2 %v516_v30  ;;  %1263 = vmatpush.msrb.mxu3 %v533_v33 }
 0x110   :  { %1205 = vmatmul.f32.vlgmr.msrb.gmra.mxu0 %v593_v34  ;;  %1245 = vmatmul.f32.vlgmr.msrb.gmra.mxu2 %v595_v35  ;;  %v927_v4 = vadd.f32 %v926_v2, %v907_v3 }
 0x111   :  { %1224 = vmatpush.msrb.mxu1 %v500_v36  ;;  %1264 = vmatpush.msrb.mxu3 %v532_v37 }
 0x112   :  { %1225 = vmatmul.f32.vlgmr.msrb.gmra.mxu1 %v594_v38  ;;  %1265 = vmatmul.f32.vlgmr.msrb.gmra.mxu3 %v596_v39  ;;  %v947_v7 = vadd.f32 %v946_v5, %v927_v4  ;;  %v27_v39 = vld [vmem:[#allocation2] sm:$0x3] }
 0x113   :  { %1352 = vmatpush.msk.msra.mxu0 %vm1288_vm1, %v1279_v21 }
 0x127   :  { %v966_v6 = vpop.f32.mrf.mxu0 }
 0x128   :  { %v967_v8 = vadd.f32 %v966_v6, %v947_v7 }
 0x12a   :  { %v986_v9 = vpop.f32.mrf.mxu1 }
 0x12b   :  { %v987_v11 = vadd.f32 %v986_v9, %v967_v8 }
 0x12d   :  { %v1006_v10 = vpop.f32.mrf.mxu2 }
 0x12e   :  { %v1007_v12 = vadd.f32 %v1006_v10, %v987_v11 }
 0x130   :  { %v1026_v14 = vpop.f32.mrf.mxu3 }
 0x131   :  { %v1027_v16 = vadd.f32 %v1026_v14, %v1007_v12 }
 0x149   :  { %v1046_v15 = vpop.f32.mrf.mxu0 }
 0x14a   :  { %v1047_v17 = vadd.f32 %v1046_v15, %v1027_v16 }
 0x14c   :  { %v1066_v18 = vpop.f32.mrf.mxu1 }
 0x14d   :  { %v1067_v20 = vadd.f32 %v1066_v18, %v1047_v17 }
 0x14f   :  { %v1086_v19 = vpop.f32.mrf.mxu2 }
 0x150   :  { %v1087_v22 = vadd.f32 %v1086_v19, %v1067_v20 }
 0x152   :  { %v1106_v23 = vpop.f32.mrf.mxu3 }
 0x153   :  { %v1107_v25 = vadd.f32 %v1106_v23, %v1087_v22 }
 0x16b   :  { %v1126_v24 = vpop.f32.mrf.mxu0 }
 0x16c   :  { %v1127_v26 = vadd.f32 %v1126_v24, %v1107_v25 }
 0x16e   :  { %v1146_v28 = vpop.f32.mrf.mxu1 }
 0x16f   :  { %v1147_v31 = vadd.f32 %v1146_v28, %v1127_v26 }
 0x171   :  { %v1166_v29 = vpop.f32.mrf.mxu2 }
 0x172   :  { %v1167_v27 = vadd.f32 %v1166_v29, %v1147_v31 }
 0x174   :  { %v1186_v32 = vpop.f32.mrf.mxu3 }
 0x175   :  { %v1187_v30 = vadd.f32 %v1186_v32, %v1167_v27 }
 0x18d   :  { %v1206_v33 = vpop.f32.mrf.mxu0 }
 0x18e   :  { %v1207_v34 = vadd.f32 %v1206_v33, %v1187_v30 }
 0x18f   :  { %v1226_v35 = vpop.f32.mrf.mxu1 }
 0x190   :  { %v1227_v36 = vadd.f32 %v1226_v35, %v1207_v34 }
 0x193   :  { %v1246_v37 = vpop.f32.mrf.mxu2 }
 0x194   :  { %v1247_v38 = vadd.f32 %v1246_v37, %v1227_v36 }
 0x195   :  { %v1266_v40 = vpop.f32.mrf.mxu3 }
 0x196   :  { %v1267_v41 = vadd.f32 %v1266_v40, %v1247_v38 }
 0x198   :  { %v1269_v42 = vadd.f32 %v1267_v41, %v27_v39 }
 0x19a   :  { %1271 = vst.msk [vmem:[#allocation2] sm:$0x3] %vm25_vm0, %v1269_v42 }
 0x1a1   :  { %v1272_v44 = vld [vmem:[#allocation2] sm:$0x3] }
 0x1a2   :  { %v1277_v45 = vadd.f32 %v1357_v43, %v1272_v44 }
 0x1a4   :  { %v1278_v46 = vmax.f32 %v1277_v45, 0.0 }
 0x1a6   :  { %1353 = vmatmul.msk.f32.vlgmr.msra.gmra.mxu0 %vm1284_vm2, %v1278_v46 }
 0x223   :  { %v1309_v48 = vpop.f32.mrf.mxu0 }
 0x224   :  { %v1310_v49 = vadd.f32 %v1358_v47, %v1309_v48 }
 0x226   :  { %v1354_v50 = vmul.f32 -1.442695, %v1310_v49 }
 0x228   :  { %1359 = vpow2.f32 %v1354_v50 }
 0x22e   :  { %v1360_v51 = vpop.eup %1359 }
 0x22f   :  { %v1315_v52 = vadd.f32 1.0, %v1360_v51 }
 0x231   :  { %1361 = vrcp.f32 %v1315_v52  ;;  %v1327_v56 = vand.u32 2147483648, %v1315_v52  ;;  %v1325_v58 = vand.u32 2147483647, %v1315_v52  ;;  %vm1321_vm4 = vweird.f32 %v1315_v52 }
 0x233   :  { %v1328_v60 = vor.u32 1.1754944e-38, %v1327_v56  ;;  %vm1326_vm7 = vcmp.eq.f32.partialorder %v1325_v58, 8.507059e+37 }
 0x237   :  { %v1362_v53 = vpop.eup %1361 }
 0x238   :  { %v1317_v54 = vmul.f32 %v1362_v53, %v1315_v52  ;;  %vm1322_vm3 = vweird.f32 %v1362_v53 }
 0x239   :  { %vm1323_vm5 = vmor %vm1321_vm4, %vm1322_vm3 }
 0x23a   :  { %v1318_v55 = vsub.f32 1.0, %v1317_v54 }
 0x23c   :  { %v1319_v57 = vmul.f32 %v1362_v53, %v1318_v55 }
 0x23e   :  { %v1320_v59 = vadd.f32 %v1362_v53, %v1319_v57 }
 0x240   :  { %v1324_v61 = vsel %vm1323_vm5, %v1362_v53, %v1320_v59 }
 0x241   :  { %v1329_v62 = vsel %vm1326_vm7, %v1328_v60, %v1324_v61 }
 0x242   :  { %1335 = vst.msk [vmem:[#allocation3] sm:$0x3] %vm1334_vm6, %v1329_v62 }
 0x243   :  { %1346 = dma.vmem_to_hbm [thread:$0]  %s1342_s6, 32, %s1344_s4, [#allocation4]  }
 0x244   :  { %1387 = dma.done.wait [#allocation4], 32  }
 0x245   :  { %1388 = vsyncadd [#allocation4], 4294967264 }
 0x246   :  { %1351 = vsyncpa [#allocation4], 1 }

</bundles_post_ra>
